<compile_context>
chip_gen: v7x
topology: tpu7x:2x2x1
jax: 0.10.0
libtpu: 0.0.40
codegen_flags: <defaults>
</compile_context>

<pallas_src>
import functools
import math
from types import SimpleNamespace

import jax
import jax.numpy as jnp
from jax.experimental import pallas as pl
from jax.experimental.pallas import tpu as pltpu


# ----------------------------------------------------------------------------
# Pallas kernel: one full BERT encoder layer for one batch tile (Bt*S rows).
# ----------------------------------------------------------------------------
def _bert_layer_kernel(x_ref,
                       wq_ref, wk_ref, wv_ref, wo_ref, wi_ref, wo2_ref,
                       bq_ref, bk_ref, bv_ref, bo_ref, bi_ref, bo2_ref,
                       ln1_g_ref, ln1_b_ref, ln2_g_ref, ln2_b_ref,
                       out_ref,
                       *, num_heads, head_dim, seq_len, batch_tile, eps):
    H = num_heads * head_dim
    M = batch_tile * seq_len

    x = x_ref[...]                                   # (M, H) f32 (residual)
    xb = x.astype(jnp.bfloat16)

    def linear(a_bf16, w_ref, b_ref):
        # bf16 x bf16 operands, f32 accumulation on the MXU; f32 bias add.
        return (jnp.dot(a_bf16, w_ref[...], preferred_element_type=jnp.float32)
                + b_ref[...])

    def ln(v, g_ref, b_ref):
        mu = jnp.mean(v, axis=-1, keepdims=True)
        var = jnp.mean((v - mu) ** 2, axis=-1, keepdims=True)
        return (v - mu) * jax.lax.rsqrt(var + eps) * g_ref[...] + b_ref[...]

    # --- self-attention -----------------------------------------------------
    scale = 1.0 / math.sqrt(head_dim)
    q = linear(xb, wq_ref, bq_ref) * scale           # scale folded into Q once
    k = linear(xb, wk_ref, bk_ref)
    v = linear(xb, wv_ref, bv_ref)

    # (M, H) -> (Bt, S, H): free split of the sublane dim when S % 8 == 0.
    # Cast once to bf16 so the per-head score / context matmuls run on the
    # bf16 MXU path (f32 accumulation via preferred_element_type).
    q3 = q.reshape(batch_tile, seq_len, H).astype(jnp.bfloat16)
    k3 = k.reshape(batch_tile, seq_len, H).astype(jnp.bfloat16)
    v3 = v.reshape(batch_tile, seq_len, H).astype(jnp.bfloat16)

    ctx_parts = []
    for h in range(num_heads):                       # static unroll over heads
        sl = slice(h * head_dim, (h + 1) * head_dim)
        qh, kh, vh = q3[:, :, sl], k3[:, :, sl], v3[:, :, sl]   # (Bt, S, hd)
        s = jnp.einsum('bqd,bkd->bqk', qh, kh,
                       preferred_element_type=jnp.float32)      # (Bt, S, S) f32
        s = s - jnp.max(s, axis=-1, keepdims=True)
        p = jnp.exp(s)
        p = p * pl.reciprocal(jnp.sum(p, axis=-1, keepdims=True), approx=True)
        ctx_h = jnp.einsum('bqk,bkd->bqd', p.astype(jnp.bfloat16), vh,
                           preferred_element_type=jnp.float32)  # (Bt, S, hd)
        ctx_parts.append(ctx_h.reshape(M, head_dim))
    ctx = jnp.concatenate(ctx_parts, axis=-1)                   # (M, H) f32

    attn_out = linear(ctx.astype(jnp.bfloat16), wo_ref, bo_ref)
    h1 = ln(x + attn_out, ln1_g_ref, ln1_b_ref)                 # residual + LN

    # --- feed-forward (hidden_act = 'relu') ----------------------------------
    inter = jnp.maximum(linear(h1.astype(jnp.bfloat16), wi_ref, bi_ref), 0.0)
    ffn = linear(inter.astype(jnp.bfloat16), wo2_ref, bo2_ref)
    h2 = ln(h1 + ffn, ln2_g_ref, ln2_b_ref)

    out_ref[...] = h2.astype(out_ref.dtype)


def _pick_batch_tile(B, S, H, I, *, target_rows=256, act_budget_bytes=8 << 20):
    """Choose Bt so Bt*S rows fill the MXU M dim but activations stay modest."""
    want = max(1, -(-target_rows // S))                  # ceil(target_rows / S)
    row_bytes = 4 * (6 * H + I + S)                      # rough f32 live bytes/row
    cap = max(1, act_budget_bytes // max(1, row_bytes * S))
    want = min(want, cap, B)
    bt = 1
    for d in range(1, B + 1):                            # largest divisor <= want
        if B % d == 0 and d <= want:
            bt = d
    # (8,128) rule: a (Bt*S, H) block must have Bt*S % 8 == 0 unless it spans
    # the full array (Bt == B), which is exempt.
    if (bt * S) % 8 != 0 and bt != B:
        bt = B
    return bt


def _vmem_limit_bytes(M, S, H, I):
    """Scoped-VMEM request sized from actual buffers (clamped for v7x's 64 MiB)."""
    weights = 2 * (4 * H * H + 2 * H * I)                # bf16 weights, one copy
    params = 4 * (10 * H + I) + 16 * 8 * 128 * 4         # biases/LN + tile padding
    act_io = 4 * M * H * 2 * 2                           # in/out tiles, 2x buffered
    live = 4 * M * (6 * H + I) + 4 * M * S               # q,k,v,ctx,h1,inter,scores
    total = 2 * weights + params + act_io + 2 * live     # 2x weights (dbl-buffer)
    return int(min(max(total, 32 * 1024 * 1024), 64 * 1024 * 1024))


def bert_layer_pallas(x, params, *, num_heads, eps=1e-12, batch_tile=None):
    """Apply one BERT encoder layer.  x: (B, S, H) float32."""
    B, S, H = x.shape
    I = params["wi"].shape[1]
    head_dim = H // num_heads

    Bt = batch_tile if batch_tile is not None else _pick_batch_tile(B, S, H, I)
    if (Bt * S) % 8 != 0 and Bt != B:
        Bt = B                                           # full-array block is exempt
    assert B % Bt == 0
    M = Bt * S

    # Present a lane-dense 2D (B*S, H) view to the kernel (layout plumbing in
    # the wrapper, not in the kernel).
    x2 = x.reshape(B * S, H).astype(jnp.float32)

    def const_spec(shape):
        zeros = (0,) * len(shape)
        # NOTE: for very large H/I on 64-MiB-VMEM parts (v7x), additionally pass
        # pipeline_mode=pl.Buffered(1) here so constant-index weights are not
        # double-buffered.
        return pl.BlockSpec(shape, lambda i, _z=zeros: _z)

    in_specs = [
        pl.BlockSpec((M, H), lambda i: (i, 0)),                       # x tile
        const_spec((H, H)), const_spec((H, H)), const_spec((H, H)),   # wq wk wv
        const_spec((H, H)), const_spec((H, I)), const_spec((I, H)),   # wo wi wo2
        const_spec((1, H)), const_spec((1, H)), const_spec((1, H)),   # bq bk bv
        const_spec((1, H)), const_spec((1, I)), const_spec((1, H)),   # bo bi bo2
        const_spec((1, H)), const_spec((1, H)),                       # ln1 g,b
        const_spec((1, H)), const_spec((1, H)),                       # ln2 g,b
    ]
    out_spec = pl.BlockSpec((M, H), lambda i: (i, 0))

    kernel = functools.partial(_bert_layer_kernel,
                               num_heads=num_heads, head_dim=head_dim,
                               seq_len=S, batch_tile=Bt, eps=eps)

    out2 = pl.pallas_call(
        kernel,
        out_shape=jax.ShapeDtypeStruct((B * S, H), jnp.float32),
        grid_spec=pltpu.PrefetchScalarGridSpec(
            num_scalar_prefetch=0,
            grid=(B // Bt,),
            in_specs=in_specs,
            out_specs=out_spec,
        ),
        compiler_params=pltpu.CompilerParams(
            dimension_semantics=("parallel",),
            vmem_limit_bytes=_vmem_limit_bytes(M, S, H, I)),
    )(x2,
      params["wq"], params["wk"], params["wv"],
      params["wo"], params["wi"], params["wo2"],
      params["bq"], params["bk"], params["bv"],
      params["bo"], params["bi"], params["bo2"],
      params["ln1_g"], params["ln1_b"], params["ln2_g"], params["ln2_b"])

    return out2.reshape(B, S, H)


# ----------------------------------------------------------------------------
# Pure-JAX reference (for correctness check of the Pallas path).
# ----------------------------------------------------------------------------
def _bert_layer_ref(x, p, *, num_heads, eps=1e-12):
    B, S, H = x.shape
    hd = H // num_heads

    def lin(a, w, b):
        return a @ w.astype(jnp.float32) + b.astype(jnp.float32)

    def ln(v, g, b):
        mu = jnp.mean(v, axis=-1, keepdims=True)
        var = jnp.mean((v - mu) ** 2, axis=-1, keepdims=True)
        return (v - mu) * jax.lax.rsqrt(var + eps) * g + b

    q = lin(x, p["wq"], p["bq"]) / math.sqrt(hd)
    k = lin(x, p["wk"], p["bk"])
    v = lin(x, p["wv"], p["bv"])
    qh = q.reshape(B, S, num_heads, hd)
    kh = k.reshape(B, S, num_heads, hd)
    vh = v.reshape(B, S, num_heads, hd)
    s = jnp.einsum('bqnd,bknd->bnqk', qh, kh)
    prob = jax.nn.softmax(s, axis=-1)
    ctx = jnp.einsum('bnqk,bknd->bqnd', prob, vh).reshape(B, S, H)
    h1 = ln(x + lin(ctx, p["wo"], p["bo"]), p["ln1_g"], p["ln1_b"])
    inter = jax.nn.relu(lin(h1, p["wi"], p["bi"]))
    return ln(h1 + lin(inter, p["wo2"], p["bo2"]), p["ln2_g"], p["ln2_b"])


# ----------------------------------------------------------------------------
# BertAggregator: builds config (bert_dic) + model, forward() returns both.
# ----------------------------------------------------------------------------
class BertAggregator:
    def __init__(self, **kwargs):
        args = kwargs["args"]
        self.bert_dic = {
            "attention_probs_dropout_prob": 0.1,
            "directionality": "bidi",
            "hidden_act": "relu",
            "hidden_dropout_prob": 0.1,
            "initializer_range": 0.02,
            "hidden_size": args.bert_hidden_dim,
            "intermediate_size": args.bert_inter_dim,
            "max_position_embeddings": args.bert_pos_dim,
            "num_attention_heads": args.bert_heads,
            "num_hidden_layers": args.bert_layer_num,
            "type_vocab_size": 2,
            "max_len": args.max_len,
            "embedding_dim": args.embed_dim,
            "vocab_size": len(kwargs["corpus"]),
            "out_size": args.out_size,
            "use_norm": args.batch_norm,
            "PAD_id": 0,
            "relative_attention": True,
            "att_type": ["p2c", "c2p"],
        }
        assert self.bert_dic["hidden_size"] % self.bert_dic["num_attention_heads"] == 0
        self.config = self.bert_dic

        # Deterministic parameter init (initializer_range=0.02 normal).
        # Weights in bf16 (MXU-friendly, half the VMEM/DMA bytes); biases and
        # LayerNorm parameters stay f32.
        H = self.bert_dic["hidden_size"]
        I = self.bert_dic["intermediate_size"]
        L = self.bert_dic["num_hidden_layers"]
        std = self.bert_dic["initializer_range"]

        key = jax.random.PRNGKey(0)
        self.layer_params = []
        for _ in range(L):
            p = {}
            for name, shape in [("wq", (H, H)), ("wk", (H, H)), ("wv", (H, H)),
                                ("wo", (H, H)), ("wi", (H, I)), ("wo2", (I, H))]:
                key, sub = jax.random.split(key)
                w = std * jax.random.normal(sub, shape, dtype=jnp.float32)
                p[name] = w.astype(jnp.bfloat16)
            p["bq"] = jnp.zeros((1, H), jnp.float32)
            p["bk"] = jnp.zeros((1, H), jnp.float32)
            p["bv"] = jnp.zeros((1, H), jnp.float32)
            p["bo"] = jnp.zeros((1, H), jnp.float32)
            p["bi"] = jnp.zeros((1, I), jnp.float32)
            p["bo2"] = jnp.zeros((1, H), jnp.float32)
            p["ln1_g"] = jnp.ones((1, H), jnp.float32)
            p["ln1_b"] = jnp.zeros((1, H), jnp.float32)
            p["ln2_g"] = jnp.ones((1, H), jnp.float32)
            p["ln2_b"] = jnp.zeros((1, H), jnp.float32)
            self.layer_params.append(p)

        num_heads = self.bert_dic["num_attention_heads"]
        layer_params = self.layer_params

        @jax.jit
        def model_fn(hidden_states):
            h = hidden_states.astype(jnp.float32)
            for p in layer_params:
                h = bert_layer_pallas(h, p, num_heads=num_heads)
            return h

        self.model = model_fn

    def forward(self):
        # Exact semantics of the PyTorch module: no compute, just return.
        return (self.model, self.config)

    __call__ = forward


# ----------------------------------------------------------------------------
if __name__ == "__main__":
    args = SimpleNamespace(
        cuda=False, use_trans=True, bert_name="deberta",
        bert_hidden_dim=32, bert_inter_dim=64, bert_pos_dim=8,
        bert_heads=4, bert_layer_num=2, max_len=8,
        embed_dim=32, out_size=2, batch_norm=False,
    )
    corpus = ["tok%d" % i for i in range(50)]

    agg = BertAggregator(args=args, corpus=corpus)
    model, config = agg.forward()          # matches the PyTorch forward()

    # Exercise the returned model (the Pallas hot path).
    B, S, H = 2, config["max_len"], config["hidden_size"]
    x = jax.random.normal(jax.random.PRNGKey(0), (B, S, H), dtype=jnp.float32)
    out = model(x)
    jax.block_until_ready(out)
    assert out.shape == (B, S, H)

    # Correctness check against a pure-JAX f32 reference (loose tolerance
    # accounts for bf16 matmul operands and approx reciprocal).
    ref = x
    for p in agg.layer_params:
        ref = _bert_layer_ref(ref, p, num_heads=config["num_attention_heads"])
    assert jnp.allclose(out, ref, atol=1e-1, rtol=1e-1), \
        float(jnp.max(jnp.abs(out - ref)))

    print("KERNEL_OK")
</pallas_src>

<mosaic_0001>
module attributes {stable_mosaic.version = 11 : i64} {
  func.func @_bert_layer_kernel(%arg0: i32, %arg1: memref<16x32xf32, #tpu.memory_space<vmem>>, %arg2: memref<32x32xbf16, #tpu.memory_space<vmem>>, %arg3: memref<32x32xbf16, #tpu.memory_space<vmem>>, %arg4: memref<32x32xbf16, #tpu.memory_space<vmem>>, %arg5: memref<32x32xbf16, #tpu.memory_space<vmem>>, %arg6: memref<32x64xbf16, #tpu.memory_space<vmem>>, %arg7: memref<64x32xbf16, #tpu.memory_space<vmem>>, %arg8: memref<1x32xf32, #tpu.memory_space<vmem>>, %arg9: memref<1x32xf32, #tpu.memory_space<vmem>>, %arg10: memref<1x32xf32, #tpu.memory_space<vmem>>, %arg11: memref<1x32xf32, #tpu.memory_space<vmem>>, %arg12: memref<1x64xf32, #tpu.memory_space<vmem>>, %arg13: memref<1x32xf32, #tpu.memory_space<vmem>>, %arg14: memref<1x32xf32, #tpu.memory_space<vmem>>, %arg15: memref<1x32xf32, #tpu.memory_space<vmem>>, %arg16: memref<1x32xf32, #tpu.memory_space<vmem>>, %arg17: memref<1x32xf32, #tpu.memory_space<vmem>>, %arg18: memref<16x32xf32, #tpu.memory_space<vmem>>) attributes {dimension_semantics = [#tpu.dimension_semantics<parallel>], iteration_bounds = array<i64: 1>, scalar_prefetch = 0 : i64, scratch_operands = 0 : i64, tpu.core_type = #tpu.core_type<tc>, window_params = [{transform_indices = @transform_0, window_bounds = array<i64: 16, 32>}, {pipeline_mode = #tpu.pipeline_mode<synchronous>, transform_indices = @transform_1, window_bounds = array<i64: 32, 32>}, {pipeline_mode = #tpu.pipeline_mode<synchronous>, transform_indices = @transform_2, window_bounds = array<i64: 32, 32>}, {pipeline_mode = #tpu.pipeline_mode<synchronous>, transform_indices = @transform_3, window_bounds = array<i64: 32, 32>}, {pipeline_mode = #tpu.pipeline_mode<synchronous>, transform_indices = @transform_4, window_bounds = array<i64: 32, 32>}, {pipeline_mode = #tpu.pipeline_mode<synchronous>, transform_indices = @transform_5, window_bounds = array<i64: 32, 64>}, {pipeline_mode = #tpu.pipeline_mode<synchronous>, transform_indices = @transform_6, window_bounds = array<i64: 64, 32>}, {pipeline_mode = #tpu.pipeline_mode<synchronous>, transform_indices = @transform_7, window_bounds = array<i64: 1, 32>}, {pipeline_mode = #tpu.pipeline_mode<synchronous>, transform_indices = @transform_8, window_bounds = array<i64: 1, 32>}, {pipeline_mode = #tpu.pipeline_mode<synchronous>, transform_indices = @transform_9, window_bounds = array<i64: 1, 32>}, {pipeline_mode = #tpu.pipeline_mode<synchronous>, transform_indices = @transform_10, window_bounds = array<i64: 1, 32>}, {pipeline_mode = #tpu.pipeline_mode<synchronous>, transform_indices = @transform_11, window_bounds = array<i64: 1, 64>}, {pipeline_mode = #tpu.pipeline_mode<synchronous>, transform_indices = @transform_12, window_bounds = array<i64: 1, 32>}, {pipeline_mode = #tpu.pipeline_mode<synchronous>, transform_indices = @transform_13, window_bounds = array<i64: 1, 32>}, {pipeline_mode = #tpu.pipeline_mode<synchronous>, transform_indices = @transform_14, window_bounds = array<i64: 1, 32>}, {pipeline_mode = #tpu.pipeline_mode<synchronous>, transform_indices = @transform_15, window_bounds = array<i64: 1, 32>}, {pipeline_mode = #tpu.pipeline_mode<synchronous>, transform_indices = @transform_16, window_bounds = array<i64: 1, 32>}, {transform_indices = @transform_17, window_bounds = array<i64: 16, 32>}]} {
    %c0 = arith.constant 0 : index
    %c0_0 = arith.constant 0 : index
    %0 = vector.load %arg1[%c0, %c0_0] : memref<16x32xf32, #tpu.memory_space<vmem>>, vector<16x32xf32>
    %1 = arith.truncf %0 : vector<16x32xf32> to vector<16x32xbf16>
    %c0_1 = arith.constant 0 : index
    %c0_2 = arith.constant 0 : index
    %2 = vector.load %arg2[%c0_1, %c0_2] : memref<32x32xbf16, #tpu.memory_space<vmem>>, vector<32x32xbf16>
    %cst = arith.constant dense<0.000000e+00> : vector<16x32xf32>
    %3 = tpu.matmul %1, %2, %cst {dimension_numbers = #tpu.dot_dimension_numbers<[1], [0], [0], [1], [0, 0, 1, 1], [], []>} : vector<16x32xbf16>, vector<32x32xbf16>, vector<16x32xf32> -> vector<16x32xf32>
    %c0_3 = arith.constant 0 : index
    %c0_4 = arith.constant 0 : index
    %4 = vector.load %arg8[%c0_3, %c0_4] : memref<1x32xf32, #tpu.memory_space<vmem>>, vector<1x32xf32>
    %5 = vector.broadcast %4 : vector<1x32xf32> to vector<16x32xf32>
    %6 = arith.addf %3, %5 : vector<16x32xf32>
    %cst_5 = arith.constant 0.353553385 : f32
    %7 = vector.broadcast %cst_5 : f32 to vector<16x32xf32>
    %8 = arith.mulf %6, %7 : vector<16x32xf32>
    %c0_6 = arith.constant 0 : index
    %c0_7 = arith.constant 0 : index
    %9 = vector.load %arg3[%c0_6, %c0_7] : memref<32x32xbf16, #tpu.memory_space<vmem>>, vector<32x32xbf16>
    %cst_8 = arith.constant dense<0.000000e+00> : vector<16x32xf32>
    %10 = tpu.matmul %1, %9, %cst_8 {dimension_numbers = #tpu.dot_dimension_numbers<[1], [0], [0], [1], [0, 0, 1, 1], [], []>} : vector<16x32xbf16>, vector<32x32xbf16>, vector<16x32xf32> -> vector<16x32xf32>
    %c0_9 = arith.constant 0 : index
    %c0_10 = arith.constant 0 : index
    %11 = vector.load %arg9[%c0_9, %c0_10] : memref<1x32xf32, #tpu.memory_space<vmem>>, vector<1x32xf32>
    %12 = vector.broadcast %11 : vector<1x32xf32> to vector<16x32xf32>
    %13 = arith.addf %10, %12 : vector<16x32xf32>
    %c0_11 = arith.constant 0 : index
    %c0_12 = arith.constant 0 : index
    %14 = vector.load %arg4[%c0_11, %c0_12] : memref<32x32xbf16, #tpu.memory_space<vmem>>, vector<32x32xbf16>
    %cst_13 = arith.constant dense<0.000000e+00> : vector<16x32xf32>
    %15 = tpu.matmul %1, %14, %cst_13 {dimension_numbers = #tpu.dot_dimension_numbers<[1], [0], [0], [1], [0, 0, 1, 1], [], []>} : vector<16x32xbf16>, vector<32x32xbf16>, vector<16x32xf32> -> vector<16x32xf32>
    %c0_14 = arith.constant 0 : index
    %c0_15 = arith.constant 0 : index
    %16 = vector.load %arg10[%c0_14, %c0_15] : memref<1x32xf32, #tpu.memory_space<vmem>>, vector<1x32xf32>
    %17 = vector.broadcast %16 : vector<1x32xf32> to vector<16x32xf32>
    %18 = arith.addf %15, %17 : vector<16x32xf32>
    %19 = vector.shape_cast %8 : vector<16x32xf32> to vector<2x8x32xf32>
    %20 = arith.truncf %19 : vector<2x8x32xf32> to vector<2x8x32xbf16>
    %21 = vector.shape_cast %13 : vector<16x32xf32> to vector<2x8x32xf32>
    %22 = arith.truncf %21 : vector<2x8x32xf32> to vector<2x8x32xbf16>
    %23 = vector.shape_cast %18 : vector<16x32xf32> to vector<2x8x32xf32>
    %24 = arith.truncf %23 : vector<2x8x32xf32> to vector<2x8x32xbf16>
    %25 = vector.extract_strided_slice %20 {offsets = [0, 0, 0], sizes = [2, 8, 8], strides = [1, 1, 1]} : vector<2x8x32xbf16> to vector<2x8x8xbf16>
    %26 = vector.extract_strided_slice %22 {offsets = [0, 0, 0], sizes = [2, 8, 8], strides = [1, 1, 1]} : vector<2x8x32xbf16> to vector<2x8x8xbf16>
    %27 = vector.extract_strided_slice %24 {offsets = [0, 0, 0], sizes = [2, 8, 8], strides = [1, 1, 1]} : vector<2x8x32xbf16> to vector<2x8x8xbf16>
    "tpu.trace_start"() <{level = 10 : i32, message = "bqd,bkd->bqk"}> : () -> ()
    %cst_16 = arith.constant dense<0.000000e+00> : vector<2x8x8xf32>
    %28 = tpu.matmul %25, %26, %cst_16 {dimension_numbers = #tpu.dot_dimension_numbers<[2], [2], [1], [1], [0, 0, 0, 1, 1, 1], [0], [0]>} : vector<2x8x8xbf16>, vector<2x8x8xbf16>, vector<2x8x8xf32> -> vector<2x8x8xf32>
    "tpu.trace_stop"() : () -> ()
    %cst_17 = arith.constant dense<0xFF800000> : vector<2x8xf32>
    %29 = vector.multi_reduction <maximumf>, %28, %cst_17 [2] : vector<2x8x8xf32> to vector<2x8xf32>
    %30 = vector.shape_cast %29 : vector<2x8xf32> to vector<2x8x1xf32>
    %31 = vector.broadcast %30 : vector<2x8x1xf32> to vector<2x8x8xf32>
    %32 = arith.subf %28, %31 : vector<2x8x8xf32>
    %33 = math.exp %32 : vector<2x8x8xf32>
    %cst_18 = arith.constant dense<0.000000e+00> : vector<2x8xf32>
    %34 = vector.multi_reduction <add>, %33, %cst_18 [2] : vector<2x8x8xf32> to vector<2x8xf32>
    %35 = vector.shape_cast %34 : vector<2x8xf32> to vector<2x8x1xf32>
    %36 = tpu.reciprocal %35 {approx = true} : vector<2x8x1xf32> -> vector<2x8x1xf32>
    %37 = vector.broadcast %36 : vector<2x8x1xf32> to vector<2x8x8xf32>
    %38 = arith.mulf %33, %37 : vector<2x8x8xf32>
    %39 = arith.truncf %38 : vector<2x8x8xf32> to vector<2x8x8xbf16>
    "tpu.trace_start"() <{level = 10 : i32, message = "bqk,bkd->bqd"}> : () -> ()
    %cst_19 = arith.constant dense<0.000000e+00> : vector<2x8x8xf32>
    %40 = tpu.matmul %39, %27, %cst_19 {dimension_numbers = #tpu.dot_dimension_numbers<[2], [1], [1], [2], [0, 0, 0, 1, 1, 2], [0], [0]>} : vector<2x8x8xbf16>, vector<2x8x8xbf16>, vector<2x8x8xf32> -> vector<2x8x8xf32>
    "tpu.trace_stop"() : () -> ()
    %41 = vector.shape_cast %40 : vector<2x8x8xf32> to vector<16x8xf32>
    %42 = vector.extract_strided_slice %20 {offsets = [0, 0, 8], sizes = [2, 8, 8], strides = [1, 1, 1]} : vector<2x8x32xbf16> to vector<2x8x8xbf16>
    %43 = vector.extract_strided_slice %22 {offsets = [0, 0, 8], sizes = [2, 8, 8], strides = [1, 1, 1]} : vector<2x8x32xbf16> to vector<2x8x8xbf16>
    %44 = vector.extract_strided_slice %24 {offsets = [0, 0, 8], sizes = [2, 8, 8], strides = [1, 1, 1]} : vector<2x8x32xbf16> to vector<2x8x8xbf16>
    "tpu.trace_start"() <{level = 10 : i32, message = "bqd,bkd->bqk"}> : () -> ()
    %cst_20 = arith.constant dense<0.000000e+00> : vector<2x8x8xf32>
    %45 = tpu.matmul %42, %43, %cst_20 {dimension_numbers = #tpu.dot_dimension_numbers<[2], [2], [1], [1], [0, 0, 0, 1, 1, 1], [0], [0]>} : vector<2x8x8xbf16>, vector<2x8x8xbf16>, vector<2x8x8xf32> -> vector<2x8x8xf32>
    "tpu.trace_stop"() : () -> ()
    %cst_21 = arith.constant dense<0xFF800000> : vector<2x8xf32>
    %46 = vector.multi_reduction <maximumf>, %45, %cst_21 [2] : vector<2x8x8xf32> to vector<2x8xf32>
    %47 = vector.shape_cast %46 : vector<2x8xf32> to vector<2x8x1xf32>
    %48 = vector.broadcast %47 : vector<2x8x1xf32> to vector<2x8x8xf32>
    %49 = arith.subf %45, %48 : vector<2x8x8xf32>
    %50 = math.exp %49 : vector<2x8x8xf32>
    %cst_22 = arith.constant dense<0.000000e+00> : vector<2x8xf32>
    %51 = vector.multi_reduction <add>, %50, %cst_22 [2] : vector<2x8x8xf32> to vector<2x8xf32>
    %52 = vector.shape_cast %51 : vector<2x8xf32> to vector<2x8x1xf32>
    %53 = tpu.reciprocal %52 {approx = true} : vector<2x8x1xf32> -> vector<2x8x1xf32>
    %54 = vector.broadcast %53 : vector<2x8x1xf32> to vector<2x8x8xf32>
    %55 = arith.mulf %50, %54 : vector<2x8x8xf32>
    %56 = arith.truncf %55 : vector<2x8x8xf32> to vector<2x8x8xbf16>
    "tpu.trace_start"() <{level = 10 : i32, message = "bqk,bkd->bqd"}> : () -> ()
    %cst_23 = arith.constant dense<0.000000e+00> : vector<2x8x8xf32>
    %57 = tpu.matmul %56, %44, %cst_23 {dimension_numbers = #tpu.dot_dimension_numbers<[2], [1], [1], [2], [0, 0, 0, 1, 1, 2], [0], [0]>} : vector<2x8x8xbf16>, vector<2x8x8xbf16>, vector<2x8x8xf32> -> vector<2x8x8xf32>
    "tpu.trace_stop"() : () -> ()
    %58 = vector.shape_cast %57 : vector<2x8x8xf32> to vector<16x8xf32>
    %59 = vector.extract_strided_slice %20 {offsets = [0, 0, 16], sizes = [2, 8, 8], strides = [1, 1, 1]} : vector<2x8x32xbf16> to vector<2x8x8xbf16>
    %60 = vector.extract_strided_slice %22 {offsets = [0, 0, 16], sizes = [2, 8, 8], strides = [1, 1, 1]} : vector<2x8x32xbf16> to vector<2x8x8xbf16>
    %61 = vector.extract_strided_slice %24 {offsets = [0, 0, 16], sizes = [2, 8, 8], strides = [1, 1, 1]} : vector<2x8x32xbf16> to vector<2x8x8xbf16>
    "tpu.trace_start"() <{level = 10 : i32, message = "bqd,bkd->bqk"}> : () -> ()
    %cst_24 = arith.constant dense<0.000000e+00> : vector<2x8x8xf32>
    %62 = tpu.matmul %59, %60, %cst_24 {dimension_numbers = #tpu.dot_dimension_numbers<[2], [2], [1], [1], [0, 0, 0, 1, 1, 1], [0], [0]>} : vector<2x8x8xbf16>, vector<2x8x8xbf16>, vector<2x8x8xf32> -> vector<2x8x8xf32>
    "tpu.trace_stop"() : () -> ()
    %cst_25 = arith.constant dense<0xFF800000> : vector<2x8xf32>
    %63 = vector.multi_reduction <maximumf>, %62, %cst_25 [2] : vector<2x8x8xf32> to vector<2x8xf32>
    %64 = vector.shape_cast %63 : vector<2x8xf32> to vector<2x8x1xf32>
    %65 = vector.broadcast %64 : vector<2x8x1xf32> to vector<2x8x8xf32>
    %66 = arith.subf %62, %65 : vector<2x8x8xf32>
    %67 = math.exp %66 : vector<2x8x8xf32>
    %cst_26 = arith.constant dense<0.000000e+00> : vector<2x8xf32>
    %68 = vector.multi_reduction <add>, %67, %cst_26 [2] : vector<2x8x8xf32> to vector<2x8xf32>
    %69 = vector.shape_cast %68 : vector<2x8xf32> to vector<2x8x1xf32>
    %70 = tpu.reciprocal %69 {approx = true} : vector<2x8x1xf32> -> vector<2x8x1xf32>
    %71 = vector.broadcast %70 : vector<2x8x1xf32> to vector<2x8x8xf32>
    %72 = arith.mulf %67, %71 : vector<2x8x8xf32>
    %73 = arith.truncf %72 : vector<2x8x8xf32> to vector<2x8x8xbf16>
    "tpu.trace_start"() <{level = 10 : i32, message = "bqk,bkd->bqd"}> : () -> ()
    %cst_27 = arith.constant dense<0.000000e+00> : vector<2x8x8xf32>
    %74 = tpu.matmul %73, %61, %cst_27 {dimension_numbers = #tpu.dot_dimension_numbers<[2], [1], [1], [2], [0, 0, 0, 1, 1, 2], [0], [0]>} : vector<2x8x8xbf16>, vector<2x8x8xbf16>, vector<2x8x8xf32> -> vector<2x8x8xf32>
    "tpu.trace_stop"() : () -> ()
    %75 = vector.shape_cast %74 : vector<2x8x8xf32> to vector<16x8xf32>
    %76 = vector.extract_strided_slice %20 {offsets = [0, 0, 24], sizes = [2, 8, 8], strides = [1, 1, 1]} : vector<2x8x32xbf16> to vector<2x8x8xbf16>
    %77 = vector.extract_strided_slice %22 {offsets = [0, 0, 24], sizes = [2, 8, 8], strides = [1, 1, 1]} : vector<2x8x32xbf16> to vector<2x8x8xbf16>
    %78 = vector.extract_strided_slice %24 {offsets = [0, 0, 24], sizes = [2, 8, 8], strides = [1, 1, 1]} : vector<2x8x32xbf16> to vector<2x8x8xbf16>
    "tpu.trace_start"() <{level = 10 : i32, message = "bqd,bkd->bqk"}> : () -> ()
    %cst_28 = arith.constant dense<0.000000e+00> : vector<2x8x8xf32>
    %79 = tpu.matmul %76, %77, %cst_28 {dimension_numbers = #tpu.dot_dimension_numbers<[2], [2], [1], [1], [0, 0, 0, 1, 1, 1], [0], [0]>} : vector<2x8x8xbf16>, vector<2x8x8xbf16>, vector<2x8x8xf32> -> vector<2x8x8xf32>
    "tpu.trace_stop"() : () -> ()
    %cst_29 = arith.constant dense<0xFF800000> : vector<2x8xf32>
    %80 = vector.multi_reduction <maximumf>, %79, %cst_29 [2] : vector<2x8x8xf32> to vector<2x8xf32>
    %81 = vector.shape_cast %80 : vector<2x8xf32> to vector<2x8x1xf32>
    %82 = vector.broadcast %81 : vector<2x8x1xf32> to vector<2x8x8xf32>
    %83 = arith.subf %79, %82 : vector<2x8x8xf32>
    %84 = math.exp %83 : vector<2x8x8xf32>
    %cst_30 = arith.constant dense<0.000000e+00> : vector<2x8xf32>
    %85 = vector.multi_reduction <add>, %84, %cst_30 [2] : vector<2x8x8xf32> to vector<2x8xf32>
    %86 = vector.shape_cast %85 : vector<2x8xf32> to vector<2x8x1xf32>
    %87 = tpu.reciprocal %86 {approx = true} : vector<2x8x1xf32> -> vector<2x8x1xf32>
    %88 = vector.broadcast %87 : vector<2x8x1xf32> to vector<2x8x8xf32>
    %89 = arith.mulf %84, %88 : vector<2x8x8xf32>
    %90 = arith.truncf %89 : vector<2x8x8xf32> to vector<2x8x8xbf16>
    "tpu.trace_start"() <{level = 10 : i32, message = "bqk,bkd->bqd"}> : () -> ()
    %cst_31 = arith.constant dense<0.000000e+00> : vector<2x8x8xf32>
    %91 = tpu.matmul %90, %78, %cst_31 {dimension_numbers = #tpu.dot_dimension_numbers<[2], [1], [1], [2], [0, 0, 0, 1, 1, 2], [0], [0]>} : vector<2x8x8xbf16>, vector<2x8x8xbf16>, vector<2x8x8xf32> -> vector<2x8x8xf32>
    "tpu.trace_stop"() : () -> ()
    %92 = vector.shape_cast %91 : vector<2x8x8xf32> to vector<16x8xf32>
    %93 = tpu.concatenate %41, %58, %75, %92 in 1 : vector<16x8xf32>, vector<16x8xf32>, vector<16x8xf32>, vector<16x8xf32> -> vector<16x32xf32>
    %94 = arith.truncf %93 : vector<16x32xf32> to vector<16x32xbf16>
    %c0_32 = arith.constant 0 : index
    %c0_33 = arith.constant 0 : index
    %95 = vector.load %arg5[%c0_32, %c0_33] : memref<32x32xbf16, #tpu.memory_space<vmem>>, vector<32x32xbf16>
    %cst_34 = arith.constant dense<0.000000e+00> : vector<16x32xf32>
    %96 = tpu.matmul %94, %95, %cst_34 {dimension_numbers = #tpu.dot_dimension_numbers<[1], [0], [0], [1], [0, 0, 1, 1], [], []>} : vector<16x32xbf16>, vector<32x32xbf16>, vector<16x32xf32> -> vector<16x32xf32>
    %c0_35 = arith.constant 0 : index
    %c0_36 = arith.constant 0 : index
    %97 = vector.load %arg11[%c0_35, %c0_36] : memref<1x32xf32, #tpu.memory_space<vmem>>, vector<1x32xf32>
    %98 = vector.broadcast %97 : vector<1x32xf32> to vector<16x32xf32>
    %99 = arith.addf %96, %98 : vector<16x32xf32>
    %100 = arith.addf %0, %99 : vector<16x32xf32>
    %cst_37 = arith.constant dense<0.000000e+00> : vector<16xf32>
    %101 = vector.multi_reduction <add>, %100, %cst_37 [1] : vector<16x32xf32> to vector<16xf32>
    %102 = vector.shape_cast %101 : vector<16xf32> to vector<16x1xf32>
    %cst_38 = arith.constant 3.200000e+01 : f32
    %103 = vector.broadcast %cst_38 : f32 to vector<16x1xf32>
    %104 = arith.divf %102, %103 : vector<16x1xf32>
    %105 = vector.broadcast %104 : vector<16x1xf32> to vector<16x32xf32>
    %106 = arith.subf %100, %105 : vector<16x32xf32>
    %107 = arith.mulf %106, %106 : vector<16x32xf32>
    %cst_39 = arith.constant dense<0.000000e+00> : vector<16xf32>
    %108 = vector.multi_reduction <add>, %107, %cst_39 [1] : vector<16x32xf32> to vector<16xf32>
    %109 = vector.shape_cast %108 : vector<16xf32> to vector<16x1xf32>
    %cst_40 = arith.constant 3.200000e+01 : f32
    %110 = vector.broadcast %cst_40 : f32 to vector<16x1xf32>
    %111 = arith.divf %109, %110 : vector<16x1xf32>
    %112 = vector.broadcast %104 : vector<16x1xf32> to vector<16x32xf32>
    %113 = arith.subf %100, %112 : vector<16x32xf32>
    %cst_41 = arith.constant 9.99999996E-13 : f32
    %114 = vector.broadcast %cst_41 : f32 to vector<16x1xf32>
    %115 = arith.addf %111, %114 : vector<16x1xf32>
    %116 = math.rsqrt %115 : vector<16x1xf32>
    %117 = vector.broadcast %116 : vector<16x1xf32> to vector<16x32xf32>
    %118 = arith.mulf %113, %117 : vector<16x32xf32>
    %c0_42 = arith.constant 0 : index
    %c0_43 = arith.constant 0 : index
    %119 = vector.load %arg14[%c0_42, %c0_43] : memref<1x32xf32, #tpu.memory_space<vmem>>, vector<1x32xf32>
    %120 = vector.broadcast %119 : vector<1x32xf32> to vector<16x32xf32>
    %121 = arith.mulf %118, %120 : vector<16x32xf32>
    %c0_44 = arith.constant 0 : index
    %c0_45 = arith.constant 0 : index
    %122 = vector.load %arg15[%c0_44, %c0_45] : memref<1x32xf32, #tpu.memory_space<vmem>>, vector<1x32xf32>
    %123 = vector.broadcast %122 : vector<1x32xf32> to vector<16x32xf32>
    %124 = arith.addf %121, %123 : vector<16x32xf32>
    %125 = arith.truncf %124 : vector<16x32xf32> to vector<16x32xbf16>
    %c0_46 = arith.constant 0 : index
    %c0_47 = arith.constant 0 : index
    %126 = vector.load %arg6[%c0_46, %c0_47] : memref<32x64xbf16, #tpu.memory_space<vmem>>, vector<32x64xbf16>
    %cst_48 = arith.constant dense<0.000000e+00> : vector<16x64xf32>
    %127 = tpu.matmul %125, %126, %cst_48 {dimension_numbers = #tpu.dot_dimension_numbers<[1], [0], [0], [1], [0, 0, 1, 1], [], []>} : vector<16x32xbf16>, vector<32x64xbf16>, vector<16x64xf32> -> vector<16x64xf32>
    %c0_49 = arith.constant 0 : index
    %c0_50 = arith.constant 0 : index
    %128 = vector.load %arg12[%c0_49, %c0_50] : memref<1x64xf32, #tpu.memory_space<vmem>>, vector<1x64xf32>
    %129 = vector.broadcast %128 : vector<1x64xf32> to vector<16x64xf32>
    %130 = arith.addf %127, %129 : vector<16x64xf32>
    %cst_51 = arith.constant 0.000000e+00 : f32
    %131 = vector.broadcast %cst_51 : f32 to vector<16x64xf32>
    %132 = arith.maximumf %130, %131 : vector<16x64xf32>
    %133 = arith.truncf %132 : vector<16x64xf32> to vector<16x64xbf16>
    %c0_52 = arith.constant 0 : index
    %c0_53 = arith.constant 0 : index
    %134 = vector.load %arg7[%c0_52, %c0_53] : memref<64x32xbf16, #tpu.memory_space<vmem>>, vector<64x32xbf16>
    %cst_54 = arith.constant dense<0.000000e+00> : vector<16x32xf32>
    %135 = tpu.matmul %133, %134, %cst_54 {dimension_numbers = #tpu.dot_dimension_numbers<[1], [0], [0], [1], [0, 0, 1, 1], [], []>} : vector<16x64xbf16>, vector<64x32xbf16>, vector<16x32xf32> -> vector<16x32xf32>
    %c0_55 = arith.constant 0 : index
    %c0_56 = arith.constant 0 : index
    %136 = vector.load %arg13[%c0_55, %c0_56] : memref<1x32xf32, #tpu.memory_space<vmem>>, vector<1x32xf32>
    %137 = vector.broadcast %136 : vector<1x32xf32> to vector<16x32xf32>
    %138 = arith.addf %135, %137 : vector<16x32xf32>
    %139 = arith.addf %124, %138 : vector<16x32xf32>
    %cst_57 = arith.constant dense<0.000000e+00> : vector<16xf32>
    %140 = vector.multi_reduction <add>, %139, %cst_57 [1] : vector<16x32xf32> to vector<16xf32>
    %141 = vector.shape_cast %140 : vector<16xf32> to vector<16x1xf32>
    %cst_58 = arith.constant 3.200000e+01 : f32
    %142 = vector.broadcast %cst_58 : f32 to vector<16x1xf32>
    %143 = arith.divf %141, %142 : vector<16x1xf32>
    %144 = vector.broadcast %143 : vector<16x1xf32> to vector<16x32xf32>
    %145 = arith.subf %139, %144 : vector<16x32xf32>
    %146 = arith.mulf %145, %145 : vector<16x32xf32>
    %cst_59 = arith.constant dense<0.000000e+00> : vector<16xf32>
    %147 = vector.multi_reduction <add>, %146, %cst_59 [1] : vector<16x32xf32> to vector<16xf32>
    %148 = vector.shape_cast %147 : vector<16xf32> to vector<16x1xf32>
    %cst_60 = arith.constant 3.200000e+01 : f32
    %149 = vector.broadcast %cst_60 : f32 to vector<16x1xf32>
    %150 = arith.divf %148, %149 : vector<16x1xf32>
    %151 = vector.broadcast %143 : vector<16x1xf32> to vector<16x32xf32>
    %152 = arith.subf %139, %151 : vector<16x32xf32>
    %cst_61 = arith.constant 9.99999996E-13 : f32
    %153 = vector.broadcast %cst_61 : f32 to vector<16x1xf32>
    %154 = arith.addf %150, %153 : vector<16x1xf32>
    %155 = math.rsqrt %154 : vector<16x1xf32>
    %156 = vector.broadcast %155 : vector<16x1xf32> to vector<16x32xf32>
    %157 = arith.mulf %152, %156 : vector<16x32xf32>
    %c0_62 = arith.constant 0 : index
    %c0_63 = arith.constant 0 : index
    %158 = vector.load %arg16[%c0_62, %c0_63] : memref<1x32xf32, #tpu.memory_space<vmem>>, vector<1x32xf32>
    %159 = vector.broadcast %158 : vector<1x32xf32> to vector<16x32xf32>
    %160 = arith.mulf %157, %159 : vector<16x32xf32>
    %c0_64 = arith.constant 0 : index
    %c0_65 = arith.constant 0 : index
    %161 = vector.load %arg17[%c0_64, %c0_65] : memref<1x32xf32, #tpu.memory_space<vmem>>, vector<1x32xf32>
    %162 = vector.broadcast %161 : vector<1x32xf32> to vector<16x32xf32>
    %163 = arith.addf %160, %162 : vector<16x32xf32>
    %c0_66 = arith.constant 0 : index
    %c0_67 = arith.constant 0 : index
    %164 = vector.load %arg18[%c0_66, %c0_67] : memref<16x32xf32, #tpu.memory_space<vmem>>, vector<16x32xf32>
    tpu.vector_store %arg18[%c0_66, %c0_67], %163 {strides = array<i32>} : memref<16x32xf32, #tpu.memory_space<vmem>>, vector<16x32xf32>,
    return
  }
  func.func @transform_0(%arg0: i32) -> (i32, i32) {
    %c0_i32 = arith.constant 0 : i32
    %c0_i32_0 = arith.constant 0 : i32
    return %arg0, %c0_i32 : i32, i32
  }
  func.func @transform_1(%arg0: i32) -> (i32, i32) {
    %c0_i32 = arith.constant 0 : i32
    %c0_i32_0 = arith.constant 0 : i32
    %c0_i32_1 = arith.constant 0 : i32
    return %c0_i32, %c0_i32_0 : i32, i32
  }
  func.func @transform_2(%arg0: i32) -> (i32, i32) {
    %c0_i32 = arith.constant 0 : i32
    %c0_i32_0 = arith.constant 0 : i32
    %c0_i32_1 = arith.constant 0 : i32
    return %c0_i32, %c0_i32_0 : i32, i32
  }
  func.func @transform_3(%arg0: i32) -> (i32, i32) {
    %c0_i32 = arith.constant 0 : i32
    %c0_i32_0 = arith.constant 0 : i32
    %c0_i32_1 = arith.constant 0 : i32
    return %c0_i32, %c0_i32_0 : i32, i32
  }
  func.func @transform_4(%arg0: i32) -> (i32, i32) {
    %c0_i32 = arith.constant 0 : i32
    %c0_i32_0 = arith.constant 0 : i32
    %c0_i32_1 = arith.constant 0 : i32
    return %c0_i32, %c0_i32_0 : i32, i32
  }
  func.func @transform_5(%arg0: i32) -> (i32, i32) {
    %c0_i32 = arith.constant 0 : i32
    %c0_i32_0 = arith.constant 0 : i32
    %c0_i32_1 = arith.constant 0 : i32
    return %c0_i32, %c0_i32_0 : i32, i32
  }
  func.func @transform_6(%arg0: i32) -> (i32, i32) {
    %c0_i32 = arith.constant 0 : i32
    %c0_i32_0 = arith.constant 0 : i32
    %c0_i32_1 = arith.constant 0 : i32
    return %c0_i32, %c0_i32_0 : i32, i32
  }
  func.func @transform_7(%arg0: i32) -> (i32, i32) {
    %c0_i32 = arith.constant 0 : i32
    %c0_i32_0 = arith.constant 0 : i32
    %c0_i32_1 = arith.constant 0 : i32
    return %c0_i32, %c0_i32_0 : i32, i32
  }
  func.func @transform_8(%arg0: i32) -> (i32, i32) {
    %c0_i32 = arith.constant 0 : i32
    %c0_i32_0 = arith.constant 0 : i32
    %c0_i32_1 = arith.constant 0 : i32
    return %c0_i32, %c0_i32_0 : i32, i32
  }
  func.func @transform_9(%arg0: i32) -> (i32, i32) {
    %c0_i32 = arith.constant 0 : i32
    %c0_i32_0 = arith.constant 0 : i32
    %c0_i32_1 = arith.constant 0 : i32
    return %c0_i32, %c0_i32_0 : i32, i32
  }
  func.func @transform_10(%arg0: i32) -> (i32, i32) {
    %c0_i32 = arith.constant 0 : i32
    %c0_i32_0 = arith.constant 0 : i32
    %c0_i32_1 = arith.constant 0 : i32
    return %c0_i32, %c0_i32_0 : i32, i32
  }
  func.func @transform_11(%arg0: i32) -> (i32, i32) {
    %c0_i32 = arith.constant 0 : i32
    %c0_i32_0 = arith.constant 0 : i32
    %c0_i32_1 = arith.constant 0 : i32
    return %c0_i32, %c0_i32_0 : i32, i32
  }
  func.func @transform_12(%arg0: i32) -> (i32, i32) {
    %c0_i32 = arith.constant 0 : i32
    %c0_i32_0 = arith.constant 0 : i32
    %c0_i32_1 = arith.constant 0 : i32
    return %c0_i32, %c0_i32_0 : i32, i32
  }
  func.func @transform_13(%arg0: i32) -> (i32, i32) {
    %c0_i32 = arith.constant 0 : i32
    %c0_i32_0 = arith.constant 0 : i32
    %c0_i32_1 = arith.constant 0 : i32
    return %c0_i32, %c0_i32_0 : i32, i32
  }
  func.func @transform_14(%arg0: i32) -> (i32, i32) {
    %c0_i32 = arith.constant 0 : i32
    %c0_i32_0 = arith.constant 0 : i32
    %c0_i32_1 = arith.constant 0 : i32
    return %c0_i32, %c0_i32_0 : i32, i32
  }
  func.func @transform_15(%arg0: i32) -> (i32, i32) {
    %c0_i32 = arith.constant 0 : i32
    %c0_i32_0 = arith.constant 0 : i32
    %c0_i32_1 = arith.constant 0 : i32
    return %c0_i32, %c0_i32_0 : i32, i32
  }
  func.func @transform_16(%arg0: i32) -> (i32, i32) {
    %c0_i32 = arith.constant 0 : i32
    %c0_i32_0 = arith.constant 0 : i32
    %c0_i32_1 = arith.constant 0 : i32
    return %c0_i32, %c0_i32_0 : i32, i32
  }
  func.func @transform_17(%arg0: i32) -> (i32, i32) {
    %c0_i32 = arith.constant 0 : i32
    %c0_i32_0 = arith.constant 0 : i32
    return %arg0, %c0_i32 : i32, i32
  }
}

module attributes {stable_mosaic.version = 11 : i64} {
  func.func @_bert_layer_kernel(%arg0: i32, %arg1: memref<16x32xf32, #tpu.memory_space<vmem>>, %arg2: memref<32x32xbf16, #tpu.memory_space<vmem>>, %arg3: memref<32x32xbf16, #tpu.memory_space<vmem>>, %arg4: memref<32x32xbf16, #tpu.memory_space<vmem>>, %arg5: memref<32x32xbf16, #tpu.memory_space<vmem>>, %arg6: memref<32x64xbf16, #tpu.memory_space<vmem>>, %arg7: memref<64x32xbf16, #tpu.memory_space<vmem>>, %arg8: memref<1x32xf32, #tpu.memory_space<vmem>>, %arg9: memref<1x32xf32, #tpu.memory_space<vmem>>, %arg10: memref<1x32xf32, #tpu.memory_space<vmem>>, %arg11: memref<1x32xf32, #tpu.memory_space<vmem>>, %arg12: memref<1x64xf32, #tpu.memory_space<vmem>>, %arg13: memref<1x32xf32, #tpu.memory_space<vmem>>, %arg14: memref<1x32xf32, #tpu.memory_space<vmem>>, %arg15: memref<1x32xf32, #tpu.memory_space<vmem>>, %arg16: memref<1x32xf32, #tpu.memory_space<vmem>>, %arg17: memref<1x32xf32, #tpu.memory_space<vmem>>, %arg18: memref<16x32xf32, #tpu.memory_space<vmem>>) attributes {dimension_semantics = [#tpu.dimension_semantics<parallel>], iteration_bounds = array<i64: 1>, scalar_prefetch = 0 : i64, scratch_operands = 0 : i64, tpu.core_type = #tpu.core_type<tc>, window_params = [{transform_indices = @transform_0, window_bounds = array<i64: 16, 32>}, {pipeline_mode = #tpu.pipeline_mode<synchronous>, transform_indices = @transform_1, window_bounds = array<i64: 32, 32>}, {pipeline_mode = #tpu.pipeline_mode<synchronous>, transform_indices = @transform_2, window_bounds = array<i64: 32, 32>}, {pipeline_mode = #tpu.pipeline_mode<synchronous>, transform_indices = @transform_3, window_bounds = array<i64: 32, 32>}, {pipeline_mode = #tpu.pipeline_mode<synchronous>, transform_indices = @transform_4, window_bounds = array<i64: 32, 32>}, {pipeline_mode = #tpu.pipeline_mode<synchronous>, transform_indices = @transform_5, window_bounds = array<i64: 32, 64>}, {pipeline_mode = #tpu.pipeline_mode<synchronous>, transform_indices = @transform_6, window_bounds = array<i64: 64, 32>}, {pipeline_mode = #tpu.pipeline_mode<synchronous>, transform_indices = @transform_7, window_bounds = array<i64: 1, 32>}, {pipeline_mode = #tpu.pipeline_mode<synchronous>, transform_indices = @transform_8, window_bounds = array<i64: 1, 32>}, {pipeline_mode = #tpu.pipeline_mode<synchronous>, transform_indices = @transform_9, window_bounds = array<i64: 1, 32>}, {pipeline_mode = #tpu.pipeline_mode<synchronous>, transform_indices = @transform_10, window_bounds = array<i64: 1, 32>}, {pipeline_mode = #tpu.pipeline_mode<synchronous>, transform_indices = @transform_11, window_bounds = array<i64: 1, 64>}, {pipeline_mode = #tpu.pipeline_mode<synchronous>, transform_indices = @transform_12, window_bounds = array<i64: 1, 32>}, {pipeline_mode = #tpu.pipeline_mode<synchronous>, transform_indices = @transform_13, window_bounds = array<i64: 1, 32>}, {pipeline_mode = #tpu.pipeline_mode<synchronous>, transform_indices = @transform_14, window_bounds = array<i64: 1, 32>}, {pipeline_mode = #tpu.pipeline_mode<synchronous>, transform_indices = @transform_15, window_bounds = array<i64: 1, 32>}, {pipeline_mode = #tpu.pipeline_mode<synchronous>, transform_indices = @transform_16, window_bounds = array<i64: 1, 32>}, {transform_indices = @transform_17, window_bounds = array<i64: 16, 32>}]} {
    %c0 = arith.constant 0 : index
    %c0_0 = arith.constant 0 : index
    %0 = vector.load %arg1[%c0, %c0_0] : memref<16x32xf32, #tpu.memory_space<vmem>>, vector<16x32xf32>
    %1 = arith.truncf %0 : vector<16x32xf32> to vector<16x32xbf16>
    %c0_1 = arith.constant 0 : index
    %c0_2 = arith.constant 0 : index
    %2 = vector.load %arg2[%c0_1, %c0_2] : memref<32x32xbf16, #tpu.memory_space<vmem>>, vector<32x32xbf16>
    %cst = arith.constant dense<0.000000e+00> : vector<16x32xf32>
    %3 = tpu.matmul %1, %2, %cst {dimension_numbers = #tpu.dot_dimension_numbers<[1], [0], [0], [1], [0, 0, 1, 1], [], []>} : vector<16x32xbf16>, vector<32x32xbf16>, vector<16x32xf32> -> vector<16x32xf32>
    %c0_3 = arith.constant 0 : index
    %c0_4 = arith.constant 0 : index
    %4 = vector.load %arg8[%c0_3, %c0_4] : memref<1x32xf32, #tpu.memory_space<vmem>>, vector<1x32xf32>
    %5 = vector.broadcast %4 : vector<1x32xf32> to vector<16x32xf32>
    %6 = arith.addf %3, %5 : vector<16x32xf32>
    %cst_5 = arith.constant 0.353553385 : f32
    %7 = vector.broadcast %cst_5 : f32 to vector<16x32xf32>
    %8 = arith.mulf %6, %7 : vector<16x32xf32>
    %c0_6 = arith.constant 0 : index
    %c0_7 = arith.constant 0 : index
    %9 = vector.load %arg3[%c0_6, %c0_7] : memref<32x32xbf16, #tpu.memory_space<vmem>>, vector<32x32xbf16>
    %cst_8 = arith.constant dense<0.000000e+00> : vector<16x32xf32>
    %10 = tpu.matmul %1, %9, %cst_8 {dimension_numbers = #tpu.dot_dimension_numbers<[1], [0], [0], [1], [0, 0, 1, 1], [], []>} : vector<16x32xbf16>, vector<32x32xbf16>, vector<16x32xf32> -> vector<16x32xf32>
    %c0_9 = arith.constant 0 : index
    %c0_10 = arith.constant 0 : index
    %11 = vector.load %arg9[%c0_9, %c0_10] : memref<1x32xf32, #tpu.memory_space<vmem>>, vector<1x32xf32>
    %12 = vector.broadcast %11 : vector<1x32xf32> to vector<16x32xf32>
    %13 = arith.addf %10, %12 : vector<16x32xf32>
    %c0_11 = arith.constant 0 : index
    %c0_12 = arith.constant 0 : index
    %14 = vector.load %arg4[%c0_11, %c0_12] : memref<32x32xbf16, #tpu.memory_space<vmem>>, vector<32x32xbf16>
    %cst_13 = arith.constant dense<0.000000e+00> : vector<16x32xf32>
    %15 = tpu.matmul %1, %14, %cst_13 {dimension_numbers = #tpu.dot_dimension_numbers<[1], [0], [0], [1], [0, 0, 1, 1], [], []>} : vector<16x32xbf16>, vector<32x32xbf16>, vector<16x32xf32> -> vector<16x32xf32>
    %c0_14 = arith.constant 0 : index
    %c0_15 = arith.constant 0 : index
    %16 = vector.load %arg10[%c0_14, %c0_15] : memref<1x32xf32, #tpu.memory_space<vmem>>, vector<1x32xf32>
    %17 = vector.broadcast %16 : vector<1x32xf32> to vector<16x32xf32>
    %18 = arith.addf %15, %17 : vector<16x32xf32>
    %19 = vector.shape_cast %8 : vector<16x32xf32> to vector<2x8x32xf32>
    %20 = arith.truncf %19 : vector<2x8x32xf32> to vector<2x8x32xbf16>
    %21 = vector.shape_cast %13 : vector<16x32xf32> to vector<2x8x32xf32>
    %22 = arith.truncf %21 : vector<2x8x32xf32> to vector<2x8x32xbf16>
    %23 = vector.shape_cast %18 : vector<16x32xf32> to vector<2x8x32xf32>
    %24 = arith.truncf %23 : vector<2x8x32xf32> to vector<2x8x32xbf16>
    %25 = vector.extract_strided_slice %20 {offsets = [0, 0, 0], sizes = [2, 8, 8], strides = [1, 1, 1]} : vector<2x8x32xbf16> to vector<2x8x8xbf16>
    %26 = vector.extract_strided_slice %22 {offsets = [0, 0, 0], sizes = [2, 8, 8], strides = [1, 1, 1]} : vector<2x8x32xbf16> to vector<2x8x8xbf16>
    %27 = vector.extract_strided_slice %24 {offsets = [0, 0, 0], sizes = [2, 8, 8], strides = [1, 1, 1]} : vector<2x8x32xbf16> to vector<2x8x8xbf16>
    "tpu.trace_start"() <{level = 10 : i32, message = "bqd,bkd->bqk"}> : () -> ()
    %cst_16 = arith.constant dense<0.000000e+00> : vector<2x8x8xf32>
    %28 = tpu.matmul %25, %26, %cst_16 {dimension_numbers = #tpu.dot_dimension_numbers<[2], [2], [1], [1], [0, 0, 0, 1, 1, 1], [0], [0]>} : vector<2x8x8xbf16>, vector<2x8x8xbf16>, vector<2x8x8xf32> -> vector<2x8x8xf32>
    "tpu.trace_stop"() : () -> ()
    %cst_17 = arith.constant dense<0xFF800000> : vector<2x8xf32>
    %29 = vector.multi_reduction <maximumf>, %28, %cst_17 [2] : vector<2x8x8xf32> to vector<2x8xf32>
    %30 = vector.shape_cast %29 : vector<2x8xf32> to vector<2x8x1xf32>
    %31 = vector.broadcast %30 : vector<2x8x1xf32> to vector<2x8x8xf32>
    %32 = arith.subf %28, %31 : vector<2x8x8xf32>
    %33 = math.exp %32 : vector<2x8x8xf32>
    %cst_18 = arith.constant dense<0.000000e+00> : vector<2x8xf32>
    %34 = vector.multi_reduction <add>, %33, %cst_18 [2] : vector<2x8x8xf32> to vector<2x8xf32>
    %35 = vector.shape_cast %34 : vector<2x8xf32> to vector<2x8x1xf32>
    %36 = tpu.reciprocal %35 {approx = true} : vector<2x8x1xf32> -> vector<2x8x1xf32>
    %37 = vector.broadcast %36 : vector<2x8x1xf32> to vector<2x8x8xf32>
    %38 = arith.mulf %33, %37 : vector<2x8x8xf32>
    %39 = arith.truncf %38 : vector<2x8x8xf32> to vector<2x8x8xbf16>
    "tpu.trace_start"() <{level = 10 : i32, message = "bqk,bkd->bqd"}> : () -> ()
    %cst_19 = arith.constant dense<0.000000e+00> : vector<2x8x8xf32>
    %40 = tpu.matmul %39, %27, %cst_19 {dimension_numbers = #tpu.dot_dimension_numbers<[2], [1], [1], [2], [0, 0, 0, 1, 1, 2], [0], [0]>} : vector<2x8x8xbf16>, vector<2x8x8xbf16>, vector<2x8x8xf32> -> vector<2x8x8xf32>
    "tpu.trace_stop"() : () -> ()
    %41 = vector.shape_cast %40 : vector<2x8x8xf32> to vector<16x8xf32>
    %42 = vector.extract_strided_slice %20 {offsets = [0, 0, 8], sizes = [2, 8, 8], strides = [1, 1, 1]} : vector<2x8x32xbf16> to vector<2x8x8xbf16>
    %43 = vector.extract_strided_slice %22 {offsets = [0, 0, 8], sizes = [2, 8, 8], strides = [1, 1, 1]} : vector<2x8x32xbf16> to vector<2x8x8xbf16>
    %44 = vector.extract_strided_slice %24 {offsets = [0, 0, 8], sizes = [2, 8, 8], strides = [1, 1, 1]} : vector<2x8x32xbf16> to vector<2x8x8xbf16>
    "tpu.trace_start"() <{level = 10 : i32, message = "bqd,bkd->bqk"}> : () -> ()
    %cst_20 = arith.constant dense<0.000000e+00> : vector<2x8x8xf32>
    %45 = tpu.matmul %42, %43, %cst_20 {dimension_numbers = #tpu.dot_dimension_numbers<[2], [2], [1], [1], [0, 0, 0, 1, 1, 1], [0], [0]>} : vector<2x8x8xbf16>, vector<2x8x8xbf16>, vector<2x8x8xf32> -> vector<2x8x8xf32>
    "tpu.trace_stop"() : () -> ()
    %cst_21 = arith.constant dense<0xFF800000> : vector<2x8xf32>
    %46 = vector.multi_reduction <maximumf>, %45, %cst_21 [2] : vector<2x8x8xf32> to vector<2x8xf32>
    %47 = vector.shape_cast %46 : vector<2x8xf32> to vector<2x8x1xf32>
    %48 = vector.broadcast %47 : vector<2x8x1xf32> to vector<2x8x8xf32>
    %49 = arith.subf %45, %48 : vector<2x8x8xf32>
    %50 = math.exp %49 : vector<2x8x8xf32>
    %cst_22 = arith.constant dense<0.000000e+00> : vector<2x8xf32>
    %51 = vector.multi_reduction <add>, %50, %cst_22 [2] : vector<2x8x8xf32> to vector<2x8xf32>
    %52 = vector.shape_cast %51 : vector<2x8xf32> to vector<2x8x1xf32>
    %53 = tpu.reciprocal %52 {approx = true} : vector<2x8x1xf32> -> vector<2x8x1xf32>
    %54 = vector.broadcast %53 : vector<2x8x1xf32> to vector<2x8x8xf32>
    %55 = arith.mulf %50, %54 : vector<2x8x8xf32>
    %56 = arith.truncf %55 : vector<2x8x8xf32> to vector<2x8x8xbf16>
    "tpu.trace_start"() <{level = 10 : i32, message = "bqk,bkd->bqd"}> : () -> ()
    %cst_23 = arith.constant dense<0.000000e+00> : vector<2x8x8xf32>
    %57 = tpu.matmul %56, %44, %cst_23 {dimension_numbers = #tpu.dot_dimension_numbers<[2], [1], [1], [2], [0, 0, 0, 1, 1, 2], [0], [0]>} : vector<2x8x8xbf16>, vector<2x8x8xbf16>, vector<2x8x8xf32> -> vector<2x8x8xf32>
    "tpu.trace_stop"() : () -> ()
    %58 = vector.shape_cast %57 : vector<2x8x8xf32> to vector<16x8xf32>
    %59 = vector.extract_strided_slice %20 {offsets = [0, 0, 16], sizes = [2, 8, 8], strides = [1, 1, 1]} : vector<2x8x32xbf16> to vector<2x8x8xbf16>
    %60 = vector.extract_strided_slice %22 {offsets = [0, 0, 16], sizes = [2, 8, 8], strides = [1, 1, 1]} : vector<2x8x32xbf16> to vector<2x8x8xbf16>
    %61 = vector.extract_strided_slice %24 {offsets = [0, 0, 16], sizes = [2, 8, 8], strides = [1, 1, 1]} : vector<2x8x32xbf16> to vector<2x8x8xbf16>
    "tpu.trace_start"() <{level = 10 : i32, message = "bqd,bkd->bqk"}> : () -> ()
    %cst_24 = arith.constant dense<0.000000e+00> : vector<2x8x8xf32>
    %62 = tpu.matmul %59, %60, %cst_24 {dimension_numbers = #tpu.dot_dimension_numbers<[2], [2], [1], [1], [0, 0, 0, 1, 1, 1], [0], [0]>} : vector<2x8x8xbf16>, vector<2x8x8xbf16>, vector<2x8x8xf32> -> vector<2x8x8xf32>
    "tpu.trace_stop"() : () -> ()
    %cst_25 = arith.constant dense<0xFF800000> : vector<2x8xf32>
    %63 = vector.multi_reduction <maximumf>, %62, %cst_25 [2] : vector<2x8x8xf32> to vector<2x8xf32>
    %64 = vector.shape_cast %63 : vector<2x8xf32> to vector<2x8x1xf32>
    %65 = vector.broadcast %64 : vector<2x8x1xf32> to vector<2x8x8xf32>
    %66 = arith.subf %62, %65 : vector<2x8x8xf32>
    %67 = math.exp %66 : vector<2x8x8xf32>
    %cst_26 = arith.constant dense<0.000000e+00> : vector<2x8xf32>
    %68 = vector.multi_reduction <add>, %67, %cst_26 [2] : vector<2x8x8xf32> to vector<2x8xf32>
    %69 = vector.shape_cast %68 : vector<2x8xf32> to vector<2x8x1xf32>
    %70 = tpu.reciprocal %69 {approx = true} : vector<2x8x1xf32> -> vector<2x8x1xf32>
    %71 = vector.broadcast %70 : vector<2x8x1xf32> to vector<2x8x8xf32>
    %72 = arith.mulf %67, %71 : vector<2x8x8xf32>
    %73 = arith.truncf %72 : vector<2x8x8xf32> to vector<2x8x8xbf16>
    "tpu.trace_start"() <{level = 10 : i32, message = "bqk,bkd->bqd"}> : () -> ()
    %cst_27 = arith.constant dense<0.000000e+00> : vector<2x8x8xf32>
    %74 = tpu.matmul %73, %61, %cst_27 {dimension_numbers = #tpu.dot_dimension_numbers<[2], [1], [1], [2], [0, 0, 0, 1, 1, 2], [0], [0]>} : vector<2x8x8xbf16>, vector<2x8x8xbf16>, vector<2x8x8xf32> -> vector<2x8x8xf32>
    "tpu.trace_stop"() : () -> ()
    %75 = vector.shape_cast %74 : vector<2x8x8xf32> to vector<16x8xf32>
    %76 = vector.extract_strided_slice %20 {offsets = [0, 0, 24], sizes = [2, 8, 8], strides = [1, 1, 1]} : vector<2x8x32xbf16> to vector<2x8x8xbf16>
    %77 = vector.extract_strided_slice %22 {offsets = [0, 0, 24], sizes = [2, 8, 8], strides = [1, 1, 1]} : vector<2x8x32xbf16> to vector<2x8x8xbf16>
    %78 = vector.extract_strided_slice %24 {offsets = [0, 0, 24], sizes = [2, 8, 8], strides = [1, 1, 1]} : vector<2x8x32xbf16> to vector<2x8x8xbf16>
    "tpu.trace_start"() <{level = 10 : i32, message = "bqd,bkd->bqk"}> : () -> ()
    %cst_28 = arith.constant dense<0.000000e+00> : vector<2x8x8xf32>
    %79 = tpu.matmul %76, %77, %cst_28 {dimension_numbers = #tpu.dot_dimension_numbers<[2], [2], [1], [1], [0, 0, 0, 1, 1, 1], [0], [0]>} : vector<2x8x8xbf16>, vector<2x8x8xbf16>, vector<2x8x8xf32> -> vector<2x8x8xf32>
    "tpu.trace_stop"() : () -> ()
    %cst_29 = arith.constant dense<0xFF800000> : vector<2x8xf32>
    %80 = vector.multi_reduction <maximumf>, %79, %cst_29 [2] : vector<2x8x8xf32> to vector<2x8xf32>
    %81 = vector.shape_cast %80 : vector<2x8xf32> to vector<2x8x1xf32>
    %82 = vector.broadcast %81 : vector<2x8x1xf32> to vector<2x8x8xf32>
    %83 = arith.subf %79, %82 : vector<2x8x8xf32>
    %84 = math.exp %83 : vector<2x8x8xf32>
    %cst_30 = arith.constant dense<0.000000e+00> : vector<2x8xf32>
    %85 = vector.multi_reduction <add>, %84, %cst_30 [2] : vector<2x8x8xf32> to vector<2x8xf32>
    %86 = vector.shape_cast %85 : vector<2x8xf32> to vector<2x8x1xf32>
    %87 = tpu.reciprocal %86 {approx = true} : vector<2x8x1xf32> -> vector<2x8x1xf32>
    %88 = vector.broadcast %87 : vector<2x8x1xf32> to vector<2x8x8xf32>
    %89 = arith.mulf %84, %88 : vector<2x8x8xf32>
    %90 = arith.truncf %89 : vector<2x8x8xf32> to vector<2x8x8xbf16>
    "tpu.trace_start"() <{level = 10 : i32, message = "bqk,bkd->bqd"}> : () -> ()
    %cst_31 = arith.constant dense<0.000000e+00> : vector<2x8x8xf32>
    %91 = tpu.matmul %90, %78, %cst_31 {dimension_numbers = #tpu.dot_dimension_numbers<[2], [1], [1], [2], [0, 0, 0, 1, 1, 2], [0], [0]>} : vector<2x8x8xbf16>, vector<2x8x8xbf16>, vector<2x8x8xf32> -> vector<2x8x8xf32>
    "tpu.trace_stop"() : () -> ()
    %92 = vector.shape_cast %91 : vector<2x8x8xf32> to vector<16x8xf32>
    %93 = tpu.concatenate %41, %58, %75, %92 in 1 : vector<16x8xf32>, vector<16x8xf32>, vector<16x8xf32>, vector<16x8xf32> -> vector<16x32xf32>
    %94 = arith.truncf %93 : vector<16x32xf32> to vector<16x32xbf16>
    %c0_32 = arith.constant 0 : index
    %c0_33 = arith.constant 0 : index
    %95 = vector.load %arg5[%c0_32, %c0_33] : memref<32x32xbf16, #tpu.memory_space<vmem>>, vector<32x32xbf16>
    %cst_34 = arith.constant dense<0.000000e+00> : vector<16x32xf32>
    %96 = tpu.matmul %94, %95, %cst_34 {dimension_numbers = #tpu.dot_dimension_numbers<[1], [0], [0], [1], [0, 0, 1, 1], [], []>} : vector<16x32xbf16>, vector<32x32xbf16>, vector<16x32xf32> -> vector<16x32xf32>
    %c0_35 = arith.constant 0 : index
    %c0_36 = arith.constant 0 : index
    %97 = vector.load %arg11[%c0_35, %c0_36] : memref<1x32xf32, #tpu.memory_space<vmem>>, vector<1x32xf32>
    %98 = vector.broadcast %97 : vector<1x32xf32> to vector<16x32xf32>
    %99 = arith.addf %96, %98 : vector<16x32xf32>
    %100 = arith.addf %0, %99 : vector<16x32xf32>
    %cst_37 = arith.constant dense<0.000000e+00> : vector<16xf32>
    %101 = vector.multi_reduction <add>, %100, %cst_37 [1] : vector<16x32xf32> to vector<16xf32>
    %102 = vector.shape_cast %101 : vector<16xf32> to vector<16x1xf32>
    %cst_38 = arith.constant 3.200000e+01 : f32
    %103 = vector.broadcast %cst_38 : f32 to vector<16x1xf32>
    %104 = arith.divf %102, %103 : vector<16x1xf32>
    %105 = vector.broadcast %104 : vector<16x1xf32> to vector<16x32xf32>
    %106 = arith.subf %100, %105 : vector<16x32xf32>
    %107 = arith.mulf %106, %106 : vector<16x32xf32>
    %cst_39 = arith.constant dense<0.000000e+00> : vector<16xf32>
    %108 = vector.multi_reduction <add>, %107, %cst_39 [1] : vector<16x32xf32> to vector<16xf32>
    %109 = vector.shape_cast %108 : vector<16xf32> to vector<16x1xf32>
    %cst_40 = arith.constant 3.200000e+01 : f32
    %110 = vector.broadcast %cst_40 : f32 to vector<16x1xf32>
    %111 = arith.divf %109, %110 : vector<16x1xf32>
    %112 = vector.broadcast %104 : vector<16x1xf32> to vector<16x32xf32>
    %113 = arith.subf %100, %112 : vector<16x32xf32>
    %cst_41 = arith.constant 9.99999996E-13 : f32
    %114 = vector.broadcast %cst_41 : f32 to vector<16x1xf32>
    %115 = arith.addf %111, %114 : vector<16x1xf32>
    %116 = math.rsqrt %115 : vector<16x1xf32>
    %117 = vector.broadcast %116 : vector<16x1xf32> to vector<16x32xf32>
    %118 = arith.mulf %113, %117 : vector<16x32xf32>
    %c0_42 = arith.constant 0 : index
    %c0_43 = arith.constant 0 : index
    %119 = vector.load %arg14[%c0_42, %c0_43] : memref<1x32xf32, #tpu.memory_space<vmem>>, vector<1x32xf32>
    %120 = vector.broadcast %119 : vector<1x32xf32> to vector<16x32xf32>
    %121 = arith.mulf %118, %120 : vector<16x32xf32>
    %c0_44 = arith.constant 0 : index
    %c0_45 = arith.constant 0 : index
    %122 = vector.load %arg15[%c0_44, %c0_45] : memref<1x32xf32, #tpu.memory_space<vmem>>, vector<1x32xf32>
    %123 = vector.broadcast %122 : vector<1x32xf32> to vector<16x32xf32>
    %124 = arith.addf %121, %123 : vector<16x32xf32>
    %125 = arith.truncf %124 : vector<16x32xf32> to vector<16x32xbf16>
    %c0_46 = arith.constant 0 : index
    %c0_47 = arith.constant 0 : index
    %126 = vector.load %arg6[%c0_46, %c0_47] : memref<32x64xbf16, #tpu.memory_space<vmem>>, vector<32x64xbf16>
    %cst_48 = arith.constant dense<0.000000e+00> : vector<16x64xf32>
    %127 = tpu.matmul %125, %126, %cst_48 {dimension_numbers = #tpu.dot_dimension_numbers<[1], [0], [0], [1], [0, 0, 1, 1], [], []>} : vector<16x32xbf16>, vector<32x64xbf16>, vector<16x64xf32> -> vector<16x64xf32>
    %c0_49 = arith.constant 0 : index
    %c0_50 = arith.constant 0 : index
    %128 = vector.load %arg12[%c0_49, %c0_50] : memref<1x64xf32, #tpu.memory_space<vmem>>, vector<1x64xf32>
    %129 = vector.broadcast %128 : vector<1x64xf32> to vector<16x64xf32>
    %130 = arith.addf %127, %129 : vector<16x64xf32>
    %cst_51 = arith.constant 0.000000e+00 : f32
    %131 = vector.broadcast %cst_51 : f32 to vector<16x64xf32>
    %132 = arith.maximumf %130, %131 : vector<16x64xf32>
    %133 = arith.truncf %132 : vector<16x64xf32> to vector<16x64xbf16>
    %c0_52 = arith.constant 0 : index
    %c0_53 = arith.constant 0 : index
    %134 = vector.load %arg7[%c0_52, %c0_53] : memref<64x32xbf16, #tpu.memory_space<vmem>>, vector<64x32xbf16>
    %cst_54 = arith.constant dense<0.000000e+00> : vector<16x32xf32>
    %135 = tpu.matmul %133, %134, %cst_54 {dimension_numbers = #tpu.dot_dimension_numbers<[1], [0], [0], [1], [0, 0, 1, 1], [], []>} : vector<16x64xbf16>, vector<64x32xbf16>, vector<16x32xf32> -> vector<16x32xf32>
    %c0_55 = arith.constant 0 : index
    %c0_56 = arith.constant 0 : index
    %136 = vector.load %arg13[%c0_55, %c0_56] : memref<1x32xf32, #tpu.memory_space<vmem>>, vector<1x32xf32>
    %137 = vector.broadcast %136 : vector<1x32xf32> to vector<16x32xf32>
    %138 = arith.addf %135, %137 : vector<16x32xf32>
    %139 = arith.addf %124, %138 : vector<16x32xf32>
    %cst_57 = arith.constant dense<0.000000e+00> : vector<16xf32>
    %140 = vector.multi_reduction <add>, %139, %cst_57 [1] : vector<16x32xf32> to vector<16xf32>
    %141 = vector.shape_cast %140 : vector<16xf32> to vector<16x1xf32>
    %cst_58 = arith.constant 3.200000e+01 : f32
    %142 = vector.broadcast %cst_58 : f32 to vector<16x1xf32>
    %143 = arith.divf %141, %142 : vector<16x1xf32>
    %144 = vector.broadcast %143 : vector<16x1xf32> to vector<16x32xf32>
    %145 = arith.subf %139, %144 : vector<16x32xf32>
    %146 = arith.mulf %145, %145 : vector<16x32xf32>
    %cst_59 = arith.constant dense<0.000000e+00> : vector<16xf32>
    %147 = vector.multi_reduction <add>, %146, %cst_59 [1] : vector<16x32xf32> to vector<16xf32>
    %148 = vector.shape_cast %147 : vector<16xf32> to vector<16x1xf32>
    %cst_60 = arith.constant 3.200000e+01 : f32
    %149 = vector.broadcast %cst_60 : f32 to vector<16x1xf32>
    %150 = arith.divf %148, %149 : vector<16x1xf32>
    %151 = vector.broadcast %143 : vector<16x1xf32> to vector<16x32xf32>
    %152 = arith.subf %139, %151 : vector<16x32xf32>
    %cst_61 = arith.constant 9.99999996E-13 : f32
    %153 = vector.broadcast %cst_61 : f32 to vector<16x1xf32>
    %154 = arith.addf %150, %153 : vector<16x1xf32>
    %155 = math.rsqrt %154 : vector<16x1xf32>
    %156 = vector.broadcast %155 : vector<16x1xf32> to vector<16x32xf32>
    %157 = arith.mulf %152, %156 : vector<16x32xf32>
    %c0_62 = arith.constant 0 : index
    %c0_63 = arith.constant 0 : index
    %158 = vector.load %arg16[%c0_62, %c0_63] : memref<1x32xf32, #tpu.memory_space<vmem>>, vector<1x32xf32>
    %159 = vector.broadcast %158 : vector<1x32xf32> to vector<16x32xf32>
    %160 = arith.mulf %157, %159 : vector<16x32xf32>
    %c0_64 = arith.constant 0 : index
    %c0_65 = arith.constant 0 : index
    %161 = vector.load %arg17[%c0_64, %c0_65] : memref<1x32xf32, #tpu.memory_space<vmem>>, vector<1x32xf32>
    %162 = vector.broadcast %161 : vector<1x32xf32> to vector<16x32xf32>
    %163 = arith.addf %160, %162 : vector<16x32xf32>
    %c0_66 = arith.constant 0 : index
    %c0_67 = arith.constant 0 : index
    %164 = vector.load %arg18[%c0_66, %c0_67] : memref<16x32xf32, #tpu.memory_space<vmem>>, vector<16x32xf32>
    tpu.vector_store %arg18[%c0_66, %c0_67], %163 {strides = array<i32>} : memref<16x32xf32, #tpu.memory_space<vmem>>, vector<16x32xf32>,
    return
  }
  func.func @transform_0(%arg0: i32) -> (i32, i32) {
    %c0_i32 = arith.constant 0 : i32
    %c0_i32_0 = arith.constant 0 : i32
    return %arg0, %c0_i32 : i32, i32
  }
  func.func @transform_1(%arg0: i32) -> (i32, i32) {
    %c0_i32 = arith.constant 0 : i32
    %c0_i32_0 = arith.constant 0 : i32
    %c0_i32_1 = arith.constant 0 : i32
    return %c0_i32, %c0_i32_0 : i32, i32
  }
  func.func @transform_2(%arg0: i32) -> (i32, i32) {
    %c0_i32 = arith.constant 0 : i32
    %c0_i32_0 = arith.constant 0 : i32
    %c0_i32_1 = arith.constant 0 : i32
    return %c0_i32, %c0_i32_0 : i32, i32
  }
  func.func @transform_3(%arg0: i32) -> (i32, i32) {
    %c0_i32 = arith.constant 0 : i32
    %c0_i32_0 = arith.constant 0 : i32
    %c0_i32_1 = arith.constant 0 : i32
    return %c0_i32, %c0_i32_0 : i32, i32
  }
  func.func @transform_4(%arg0: i32) -> (i32, i32) {
    %c0_i32 = arith.constant 0 : i32
    %c0_i32_0 = arith.constant 0 : i32
    %c0_i32_1 = arith.constant 0 : i32
    return %c0_i32, %c0_i32_0 : i32, i32
  }
  func.func @transform_5(%arg0: i32) -> (i32, i32) {
    %c0_i32 = arith.constant 0 : i32
    %c0_i32_0 = arith.constant 0 : i32
    %c0_i32_1 = arith.constant 0 : i32
    return %c0_i32, %c0_i32_0 : i32, i32
  }
  func.func @transform_6(%arg0: i32) -> (i32, i32) {
    %c0_i32 = arith.constant 0 : i32
    %c0_i32_0 = arith.constant 0 : i32
    %c0_i32_1 = arith.constant 0 : i32
    return %c0_i32, %c0_i32_0 : i32, i32
  }
  func.func @transform_7(%arg0: i32) -> (i32, i32) {
    %c0_i32 = arith.constant 0 : i32
    %c0_i32_0 = arith.constant 0 : i32
    %c0_i32_1 = arith.constant 0 : i32
    return %c0_i32, %c0_i32_0 : i32, i32
  }
  func.func @transform_8(%arg0: i32) -> (i32, i32) {
    %c0_i32 = arith.constant 0 : i32
    %c0_i32_0 = arith.constant 0 : i32
    %c0_i32_1 = arith.constant 0 : i32
    return %c0_i32, %c0_i32_0 : i32, i32
  }
  func.func @transform_9(%arg0: i32) -> (i32, i32) {
    %c0_i32 = arith.constant 0 : i32
    %c0_i32_0 = arith.constant 0 : i32
    %c0_i32_1 = arith.constant 0 : i32
    return %c0_i32, %c0_i32_0 : i32, i32
  }
  func.func @transform_10(%arg0: i32) -> (i32, i32) {
    %c0_i32 = arith.constant 0 : i32
    %c0_i32_0 = arith.constant 0 : i32
    %c0_i32_1 = arith.constant 0 : i32
    return %c0_i32, %c0_i32_0 : i32, i32
  }
  func.func @transform_11(%arg0: i32) -> (i32, i32) {
    %c0_i32 = arith.constant 0 : i32
    %c0_i32_0 = arith.constant 0 : i32
    %c0_i32_1 = arith.constant 0 : i32
    return %c0_i32, %c0_i32_0 : i32, i32
  }
  func.func @transform_12(%arg0: i32) -> (i32, i32) {
    %c0_i32 = arith.constant 0 : i32
    %c0_i32_0 = arith.constant 0 : i32
    %c0_i32_1 = arith.constant 0 : i32
    return %c0_i32, %c0_i32_0 : i32, i32
  }
  func.func @transform_13(%arg0: i32) -> (i32, i32) {
    %c0_i32 = arith.constant 0 : i32
    %c0_i32_0 = arith.constant 0 : i32
    %c0_i32_1 = arith.constant 0 : i32
    return %c0_i32, %c0_i32_0 : i32, i32
  }
  func.func @transform_14(%arg0: i32) -> (i32, i32) {
    %c0_i32 = arith.constant 0 : i32
    %c0_i32_0 = arith.constant 0 : i32
    %c0_i32_1 = arith.constant 0 : i32
    return %c0_i32, %c0_i32_0 : i32, i32
  }
  func.func @transform_15(%arg0: i32) -> (i32, i32) {
    %c0_i32 = arith.constant 0 : i32
    %c0_i32_0 = arith.constant 0 : i32
    %c0_i32_1 = arith.constant 0 : i32
    return %c0_i32, %c0_i32_0 : i32, i32
  }
  func.func @transform_16(%arg0: i32) -> (i32, i32) {
    %c0_i32 = arith.constant 0 : i32
    %c0_i32_0 = arith.constant 0 : i32
    %c0_i32_1 = arith.constant 0 : i32
    return %c0_i32, %c0_i32_0 : i32, i32
  }
  func.func @transform_17(%arg0: i32) -> (i32, i32) {
    %c0_i32 = arith.constant 0 : i32
    %c0_i32_0 = arith.constant 0 : i32
    return %arg0, %c0_i32 : i32, i32
  }
}

</mosaic_0001>

<bundles_post_ra>
// kernel: model_fn.3
= control target key start
LH: loop header
LB: loop body
LE: loop exit
PB: predicated region body
PF: predicated region fallthrough
CT: control target
= control target key end

     0   :  { %s2264_s0 = inlined_call_operand.vmem [shape: f32[16,32], index: 0, kind: input, shape index: {}]   ;;  %s2265_s1 = inlined_call_operand.vmem [shape: bf16[32,32], index: 1, kind: input, shape index: {}]   ;;  %s2266_s2 = inlined_call_operand.vmem [shape: bf16[32,32], index: 2, kind: input, shape index: {}]   ;;  %s2267_s3 = inlined_call_operand.vmem [shape: bf16[32,32], index: 3, kind: input, shape index: {}]   ;;  %s2268_s4 = inlined_call_operand.vmem [shape: bf16[32,32], index: 4, kind: input, shape index: {}]   ;;  %s2269_s5 = inlined_call_operand.vmem [shape: bf16[32,64], index: 5, kind: input, shape index: {}]   ;;  %s2270_s6 = inlined_call_operand.vmem [shape: bf16[64,32], index: 6, kind: input, shape index: {}]   ;;  %s2271_s7 = inlined_call_operand.vmem [shape: f32[1,32], index: 7, kind: input, shape index: {}, may-alias: {7,8,9,10,12,14,16}]   ;;  %s2272_s8 = inlined_call_operand.vmem [shape: f32[1,32], index: 8, kind: input, shape index: {}, may-alias: {7,8,9,10,12,14,16}]   ;;  %s2273_s9 = inlined_call_operand.vmem [shape: f32[1,32], index: 9, kind: input, shape index: {}, may-alias: {7,8,9,10,12,14,16}]   ;;  %s2274_s10 = inlined_call_operand.vmem [shape: f32[1,32], index: 10, kind: input, shape index: {}, may-alias: {7,8,9,10,12,14,16}]   ;;  %s2275_s11 = inlined_call_operand.vmem [shape: f32[1,64], index: 11, kind: input, shape index: {}]   ;;  %s2276_s12 = inlined_call_operand.vmem [shape: f32[1,32], index: 12, kind: input, shape index: {}, may-alias: {7,8,9,10,12,14,16}]   ;;  %s2277_s13 = inlined_call_operand.vmem [shape: f32[1,32], index: 13, kind: input, shape index: {}, may-alias: {13,15}]   ;;  %s2278_s14 = inlined_call_operand.vmem [shape: f32[1,32], index: 14, kind: input, shape index: {}, may-alias: {7,8,9,10,12,14,16}]   ;;  %s2279_s15 = inlined_call_operand.vmem [shape: f32[1,32], index: 15, kind: input, shape index: {}, may-alias: {13,15}]   ;;  %s2280_s16 = inlined_call_operand.vmem [shape: f32[1,32], index: 16, kind: input, shape index: {}, may-alias: {7,8,9,10,12,14,16}]   ;;  %s2281_s17 = inlined_call_operand.hbm [shape: f32[16,32], index: 17, kind: output, shape index: {}]  }
   0x1   :  { %2284 = sst [smem:[#allocation5_spill]] %s2264_s0 }
   0x2   :  { %2285 = sst [smem:[#allocation6_spill]] %s2265_s1 }
   0x3   :  { %v1778_v0 = vld [vmem:[%s2266_s2] sm:$0xff]   ;;  %v1856_v1 = vmov 0.0   ;;  %s2286_s28 = sld [smem:[#allocation6_spill]]  ;;  %v1780_v3 = vld [vmem:[%s2266_s2 + $0x8] sm:$0xff]   ;;  %vm1857_vm0 = vmmov 0   ;;  %s2287_s20 = sld [smem:[#allocation5_spill]] }
   0x4   :  { %1613 = vmatprep.subr.bf16.mxu1 %v1856_v1  ;;  %1605 = vmatprep.subr.bf16.mxu0 %v1856_v1  ;;  %vm84_vm1 = vcmask 261120   ;;  %v1782_v8 = vld [vmem:[%s2267_s3] sm:$0xff]   ;;  %v1783_v9 = vld [vmem:[%s2267_s3 + $0x8] sm:$0xff]  }
   0x5   :  { %1614 = vmatpush3.bf16.msra.mxu1 %v1778_v0  ;;  %1617 = vmatprep.mubr.msk.bf16.mxu1 %vm1857_vm0, %v1856_v1 }
   0x6   :  { %1615 = vmatprep.subr.bf16.mxu1 %v1856_v1  ;;  %1609 = vmatprep.mubr.msk.bf16.mxu0 %vm1857_vm0, %v1856_v1 }
   0x9   :  { %v1779_v2 = vld [vmem:[%s2286_s28] sm:$0xff]   ;;  %v1781_v4 = vld [vmem:[%s2286_s28 + $0x8] sm:$0xff]   ;;  %1616 = vmatpush3.bf16.msra.mxu1 %v1780_v3 }
   0xa   :  { %1606 = vmatpush3.bf16.msra.mxu0 %v1779_v2  ;;  %v1977_v5 = vld [vmem:[%s2287_s20] sm:$0xff]  ;;  %v1982_v6 = vld [vmem:[%s2287_s20 + $0x8] sm:$0xff]  ;;  %1629 = vmatprep.subr.bf16.mxu1 %v1856_v1 }
   0xb   :  { %1607 = vmatprep.subr.bf16.mxu0 %v1856_v1  ;;  %v60_v7 = vpack.c.bf16 %v1982_v6, %v1977_v5 }
   0xd   :  { %1618 = vmatmul.mubr.msk.bf16.vlgmr.msra.gmra.mrb[0].mxu1 %vm84_vm1, %v60_v7 }
   0xe   :  { %1608 = vmatpush3.bf16.msra.mxu0 %v1781_v4  ;;  %1631 = vmatprep.mubr.msk.bf16.mxu1 %vm1857_vm0, %v1856_v1 }
   0xf   :  { %1621 = vmatprep.subr.bf16.mxu0 %v1856_v1 }
  0x11   :  { %1610 = vmatmul.mubr.msk.bf16.vlgmr.msra.gmra.mrb[0].mxu0 %vm84_vm1, %v60_v7 }
  0x12   :  { %1622 = vmatpush3.bf16.msra.mxu0 %v1782_v8  ;;  %1625 = vmatprep.mubr.msk.bf16.mxu0 %vm1857_vm0, %v1856_v1 }
  0x13   :  { %1623 = vmatprep.subr.bf16.mxu0 %v1856_v1 }
  0x14   :  { %22 = vsyncpa [#allocation3], 0  ;;  %v1511_v10 = vld [vmem:[%s2272_s8] ss:$0 sm:$0xff]  ;;  %vm265_vm2 = vcmask 64512   ;;  %vm385_vm3 = vcmask 1043456  }
  0x15   :  { %v1507_v11 = vld [vmem:[%s2271_s7] ss:$0 sm:$0xff]  ;;  %s1858_s7 = smov 120   ;;  %s1860_s0 = smov 104   ;;  %vm1167_vm4 = vcmask 130048   ;;  %vm1170_vm5 = vcmask 195584  }
  0x16   :  { %1624 = vmatpush3.bf16.msra.mxu0 %v1783_v9  ;;  %v1515_v36 = vld [vmem:[%s2273_s9] ss:$0 sm:$0xff]  ;;  %s1859_s9 = smov 112   ;;  %s1861_s30 = smov 8   ;;  %vm1398_vm6 = vcmask 523264  }
  0x17   :  { %1635 = vmatprep.subr.bf16.mxu0 %v1856_v1  ;;  %s1862_s18 = smov 16   ;;  %s1863_s2 = smov 24  }
  0x19   :  { %1626 = vmatmul.mubr.msk.bf16.vlgmr.msra.gmra.mrb[4].mxu0 %vm84_vm1, %v60_v7 }
  0x1a   :  { %1637 = vmatprep.mubr.msk.bf16.mxu0 %vm1857_vm0, %v1856_v1 }
  0xe0   :  { %v188_v12 = vpop.f32.mrb[0].mxu1 }
  0xe1   :  { %v189_v13 = vadd.f32 %v1511_v10, %v188_v12  ;;  %v1619_v14 = vpop.f32.mrb[1].mxu1 }
  0xe2   :  { %v191_v16 = vpop.f32.mrb[2].mxu1 }
  0xe3   :  { %v2013_v19 = vpack.c.bf16 %v189_v13, %v189_v13  ;;  %v192_v20 = vadd.f32 %v1511_v10, %v191_v16  ;;  %v1620_v21 = vpop.f32.mrb[3].mxu1 }
  0xe4   :  { %v122_v15 = vpop.f32.mrb[0].mxu0 }
  0xe5   :  { %v123_v17 = vadd.f32 %v1507_v11, %v122_v15  ;;  %v1611_v18 = vpop.f32.mrb[1].mxu0  ;;  %v2015_v24 = vpack.c.bf16 %v192_v20, %v192_v20  ;;  %v270_v27 = vsel %vm265_vm2, %v2013_v19, 0 }
  0xe6   :  { %v125_v22 = vpop.f32.mrb[2].mxu0  ;;  %1630 = vmatpush3.bf16.xpose.msra.mxu1 %v270_v27 }
  0xe7   :  { %v1612_v23 = vpop.f32.mrb[3].mxu0  ;;  %v129_v25 = vmul.f32 0.35355338, %v123_v17  ;;  %v126_v26 = vadd.f32 %v1507_v11, %v125_v22  ;;  %531 = vrot.lane.b32.xlu1 %v2015_v24, %s1858_s7  ;;  %v316_v28 = vsel %vm265_vm2, %v2015_v24, 0  ;;  %1641 = vmatprep.subr.bf16.mxu1 %v1856_v1 }
  0xe8   :  { %1636 = vmatpush3.bf16.xpose.msra.mxu0 %v316_v28 }
  0xe9   :  { %v2024_v29 = vpack.c.bf16 %v129_v25, %v129_v25  ;;  %v130_v30 = vmul.f32 0.35355338, %v126_v26  ;;  %1647 = vmatprep.subr.bf16.mxu0 %v1856_v1 }
  0xeb   :  { %v2027_v35 = vpack.c.bf16 %v130_v30, %v130_v30 }
  0xec   :  { %v252_v31 = vpop.f32.mrb[4].mxu0 }
  0xed   :  { %v1627_v32 = vpop.f32.mrb[5].mxu0  ;;  %1632 = vmatmul.mubr.msk.bf16.vlgmr.msra.gmra.mrb[4].mxu1 %vm265_vm2, %v2024_v29  ;;  %v253_v37 = vadd.f32 %v1515_v36, %v252_v31 }
  0xee   :  { %v255_v33 = vpop.f32.mrb[6].mxu0  ;;  %1643 = vmatprep.mubr.msk.bf16.mxu1 %vm1857_vm0, %v1856_v1 }
  0xef   :  { %v1628_v34 = vpop.f32.mrb[7].mxu0  ;;  %1638 = vmatmul.mubr.msk.bf16.vlgmr.msra.gmra.mrb[8].mxu0 %vm265_vm2, %v2027_v35  ;;  %v256_v38 = vadd.f32 %v1515_v36, %v255_v33  ;;  %v2040_v39 = vpack.c.bf16 %v253_v37, %v253_v37 }
  0xf0   :  { %1649 = vmatprep.mubr.msk.bf16.mxu0 %vm1857_vm0, %v1856_v1 }
  0xf1   :  { %v2042_v40 = vpack.c.bf16 %v256_v38, %v256_v38  ;;  %v387_v41 = vsel %vm385_vm3, %v2040_v39, 0 }
  0xf2   :  { %1642 = vmatpush3.bf16.msra.mxu1 %v387_v41 }
  0xf3   :  { %v433_v42 = vsel %vm385_vm3, %v2042_v40, 0  ;;  %1653 = vmatprep.subr.bf16.mxu1 %v1856_v1 }
  0xf4   :  { %1648 = vmatpush3.bf16.msra.mxu0 %v433_v42 }
  0xf5   :  { %1659 = vmatprep.subr.bf16.mxu0 %v1856_v1 }
 0x159   :  { %v532_v63 = vpop.permute.xlu1 %531 }
 0x15a   :  { %v537_v13 = vsel %vm265_vm2, %v532_v63, 0 }
 0x1c0   :  { %v306_v43 = vpop.f32.mrb[4].mxu1 }
 0x1c1   :  { %v1633_v44 = vpop.f32.mrb[5].mxu1  ;;  %v358_v45 = vsel %vm265_vm2, %v306_v43, -inf }
 0x1c2   :  { %359 = vmax.xlane.f32.xlu0 %v358_v45  ;;  %v309_v46 = vpop.f32.mrb[6].mxu1  ;;  %v352_v47 = vpop.f32.mrb[8].mxu0 }
 0x1c3   :  { %v1634_v48 = vpop.f32.mrb[7].mxu1  ;;  %v1639_v49 = vpop.f32.mrb[9].mxu0  ;;  %v361_v52 = vsel %vm265_vm2, %v352_v47, -inf }
 0x1c4   :  { %v355_v50 = vpop.f32.mrb[10].mxu0 }
 0x1c5   :  { %v1640_v51 = vpop.f32.mrb[11].mxu0 }
 0x1c6   :  { %362 = vmax.xlane.f32.xlu0 %v361_v52 }
 0x1dc   :  { %479 = vrot.lane.b32.xlu0 %v2013_v19, %s1858_s7 }
 0x24f   :  { %v360_v53 = vpop.xlane.xlu0 %359 }
 0x250   :  { %v364_v54 = vsub.f32 %v306_v43, %v360_v53 }
 0x252   :  { %v366_v55 = vmul.f32 1.442695, %v364_v54 }
 0x253   :  { %v363_v56 = vpop.xlane.xlu0 %362 }
 0x254   :  { %1792 = vpow2.f32 %v366_v55  ;;  %v365_v57 = vsub.f32 %v352_v47, %v363_v56 }
 0x256   :  { %v368_v58 = vmul.f32 1.442695, %v365_v57 }
 0x257   :  { %v480_v7 = vpop.permute.xlu0 %479 }
 0x258   :  { %1794 = vpow2.f32 %v368_v58  ;;  %v485_v10 = vsel %vm265_vm2, %v480_v7, 0 }
 0x25e   :  { %v1793_v59 = vpop.eup %1792 }
 0x25f   :  { %v370_v60 = vsel %vm265_vm2, %v1793_v59, 0.0 }
 0x260   :  { %371 = vadd.xlane.f32.xlu1 %v370_v60 }
 0x262   :  { %v1795_v61 = vpop.eup %1794 }
 0x263   :  { %v373_v62 = vsel %vm265_vm2, %v1795_v61, 0.0 }
 0x264   :  { %374 = vadd.xlane.f32.xlu1 %v373_v62 }
 0x275   :  { %476 = vrot.lane.b32.xlu1 %v2024_v29, %s1858_s7 }
 0x279   :  { %528 = vrot.lane.b32.xlu1 %v2027_v35, %s1858_s7 }
 0x2ed   :  { %v372_v0 = vpop.xlane.xlu1 %371 }
 0x2ee   :  { %1796 = vrcp.f32 %v372_v0 }
 0x2f1   :  { %v375_v2 = vpop.xlane.xlu1 %374 }
 0x2f2   :  { %1798 = vrcp.f32 %v375_v2 }
 0x2f5   :  { %v477_v14 = vpop.permute.xlu1 %476 }
 0x2f8   :  { %v1797_v3 = vpop.eup %1796 }
 0x2f9   :  { %v378_v4 = vmul.f32 %v1797_v3, %v1793_v59  ;;  %v529_v15 = vpop.permute.xlu1 %528 }
 0x2fb   :  { %v380_v8 = vpack.c.bf16 %v378_v4, %v378_v4 }
 0x2fc   :  { %v1799_v9 = vpop.eup %1798 }
 0x2fd   :  { %v379_v11 = vmul.f32 %v1799_v9, %v1795_v61  ;;  %1644 = vmatmul.mubr.msk.bf16.vlgmr.msra.gmra.mrb[8].mxu1 %vm265_vm2, %v380_v8 }
 0x2fe   :  { %1654 = vmatpush3.bf16.xpose.msra.mxu1 %v485_v10  ;;  %1655 = vmatprep.mubr.msk.bf16.mxu1 %vm1857_vm0, %v1856_v1 }
 0x2ff   :  { %v381_v12 = vpack.c.bf16 %v379_v11, %v379_v11  ;;  %1665 = vmatprep.subr.bf16.mxu1 %v1856_v1 }
 0x301   :  { %1650 = vmatmul.mubr.msk.bf16.vlgmr.msra.gmra.mrb[12].mxu0 %vm265_vm2, %v381_v12 }
 0x302   :  { %1660 = vmatpush3.bf16.xpose.msra.mxu0 %v537_v13  ;;  %1661 = vmatprep.mubr.msk.bf16.mxu0 %vm1857_vm0, %v1856_v1 }
 0x303   :  { %1671 = vmatprep.subr.bf16.mxu0 %v1856_v1 }
 0x305   :  { %1656 = vmatmul.mubr.msk.bf16.vlgmr.msra.gmra.mrb[12].mxu1 %vm265_vm2, %v477_v14 }
 0x306   :  { %1667 = vmatprep.mubr.msk.bf16.mxu1 %vm1857_vm0, %v1856_v1 }
 0x309   :  { %1662 = vmatmul.mubr.msk.bf16.vlgmr.msra.gmra.mrb[16].mxu0 %vm265_vm2, %v529_v15 }
 0x30a   :  { %1673 = vmatprep.mubr.msk.bf16.mxu0 %vm1857_vm0, %v1856_v1 }
 0x3d0   :  { %v2076_v16 = vpop.f32.mrb[8].mxu1 }
 0x3d1   :  { %v1645_v17 = vpop.f32.mrb[9].mxu1 }
 0x3d2   :  { %v426_v18 = vpop.f32.mrb[10].mxu1 }
 0x3d3   :  { %v1646_v20 = vpop.f32.mrb[11].mxu1 }
 0x3d4   :  { %v2078_v21 = vpop.f32.mrb[12].mxu0 }
 0x3d5   :  { %v1651_v22 = vpop.f32.mrb[13].mxu0 }
 0x3d6   :  { %v472_v23 = vpop.f32.mrb[14].mxu0 }
 0x3d7   :  { %v1652_v25 = vpop.f32.mrb[15].mxu0 }
 0x3d8   :  { %v521_v26 = vpop.f32.mrb[12].mxu1 }
 0x3d9   :  { %v1657_v27 = vpop.f32.mrb[13].mxu1  ;;  %v579_v28 = vsel %vm265_vm2, %v521_v26, -inf }
 0x3da   :  { %580 = vmax.xlane.f32.xlu0 %v579_v28  ;;  %v524_v30 = vpop.f32.mrb[14].mxu1 }
 0x3db   :  { %v1658_v31 = vpop.f32.mrb[15].mxu1 }
 0x3dc   :  { %v573_v32 = vpop.f32.mrb[16].mxu0 }
 0x3dd   :  { %v1663_v33 = vpop.f32.mrb[17].mxu0  ;;  %v582_v34 = vsel %vm265_vm2, %v573_v32, -inf }
 0x3de   :  { %583 = vmax.xlane.f32.xlu1 %v582_v34  ;;  %v576_v36 = vpop.f32.mrb[18].mxu0 }
 0x3df   :  { %v1664_v37 = vpop.f32.mrb[19].mxu0 }
 0x3ef   :  { %653 = vrot.lane.b32.xlu1 %v2042_v40, %s1858_s7 }
 0x3f3   :  { %703 = vrot.lane.b32.xlu1 %v2013_v19, %s1859_s9 }
 0x3f7   :  { %753 = vrot.lane.b32.xlu1 %v2015_v24, %s1859_s9 }
 0x3fb   :  { %751 = vrot.lane.b32.xlu1 %v2027_v35, %s1859_s9 }
 0x467   :  { %v581_v38 = vpop.xlane.xlu0 %580 }
 0x468   :  { %v585_v41 = vsub.f32 %v521_v26, %v581_v38 }
 0x46a   :  { %v587_v42 = vmul.f32 1.442695, %v585_v41 }
 0x46b   :  { %v584_v43 = vpop.xlane.xlu1 %583 }
 0x46c   :  { %1800 = vpow2.f32 %v587_v42  ;;  %v586_v44 = vsub.f32 %v573_v32, %v584_v43 }
 0x46e   :  { %v589_v45 = vmul.f32 1.442695, %v586_v44 }
 0x46f   :  { %v654_v46 = vpop.permute.xlu1 %653 }
 0x470   :  { %1802 = vpow2.f32 %v589_v45  ;;  %v659_v47 = vsel %vm385_vm3, %v654_v46, 0 }
 0x471   :  { %1672 = vmatpush3.bf16.msra.mxu0 %v659_v47 }
 0x472   :  { %1683 = vmatprep.subr.bf16.mxu0 %v1856_v1 }
 0x473   :  { %v704_v57 = vpop.permute.xlu1 %703 }
 0x474   :  { %v709_v63 = vsel %vm265_vm2, %v704_v57, 0 }
 0x476   :  { %v1801_v48 = vpop.eup %1800 }
 0x477   :  { %v591_v49 = vsel %vm265_vm2, %v1801_v48, 0.0  ;;  %v754_v62 = vpop.permute.xlu1 %753 }
 0x478   :  { %592 = vadd.xlane.f32.xlu0 %v591_v49  ;;  %v759_v2 = vsel %vm265_vm2, %v754_v62, 0 }
 0x47a   :  { %v1803_v50 = vpop.eup %1802 }
 0x47b   :  { %v594_v51 = vsel %vm265_vm2, %v1803_v50, 0.0  ;;  %v752_v4 = vpop.permute.xlu1 %751 }
 0x47c   :  { %595 = vadd.xlane.f32.xlu0 %v594_v51 }
 0x492   :  { %604 = vrot.lane.b32.xlu0 %v2040_v39, %s1858_s7 }
 0x496   :  { %701 = vrot.lane.b32.xlu0 %v2024_v29, %s1859_s9 }
 0x505   :  { %v593_v52 = vpop.xlane.xlu0 %592 }
 0x506   :  { %1804 = vrcp.f32 %v593_v52 }
 0x509   :  { %v596_v53 = vpop.xlane.xlu0 %595 }
 0x50a   :  { %1806 = vrcp.f32 %v596_v53 }
 0x50d   :  { %v605_v54 = vpop.permute.xlu0 %604 }
 0x50e   :  { %v610_v55 = vsel %vm385_vm3, %v605_v54, 0 }
 0x50f   :  { %1666 = vmatpush3.bf16.msra.mxu1 %v610_v55 }
 0x510   :  { %v1805_v56 = vpop.eup %1804  ;;  %1677 = vmatprep.subr.bf16.mxu1 %v1856_v1 }
 0x511   :  { %v599_v58 = vmul.f32 %v1805_v56, %v1801_v48  ;;  %v702_v3 = vpop.permute.xlu0 %701 }
 0x513   :  { %v601_v59 = vpack.c.bf16 %v599_v58, %v599_v58 }
 0x514   :  { %v1807_v60 = vpop.eup %1806 }
 0x515   :  { %v600_v61 = vmul.f32 %v1807_v60, %v1803_v50  ;;  %1668 = vmatmul.mubr.msk.bf16.vlgmr.msra.gmra.mrb[16].mxu1 %vm265_vm2, %v601_v59 }
 0x516   :  { %1679 = vmatprep.mubr.msk.bf16.mxu1 %vm1857_vm0, %v1856_v1 }
 0x517   :  { %v602_v0 = vpack.c.bf16 %v600_v61, %v600_v61 }
 0x518   :  { %1678 = vmatpush3.bf16.xpose.msra.mxu1 %v709_v63 }
 0x519   :  { %1674 = vmatmul.mubr.msk.bf16.vlgmr.msra.gmra.mrb[20].mxu0 %vm265_vm2, %v602_v0  ;;  %1689 = vmatprep.subr.bf16.mxu1 %v1856_v1 }
 0x51a   :  { %1684 = vmatpush3.bf16.xpose.msra.mxu0 %v759_v2  ;;  %1685 = vmatprep.mubr.msk.bf16.mxu0 %vm1857_vm0, %v1856_v1 }
 0x51b   :  { %1695 = vmatprep.subr.bf16.mxu0 %v1856_v1 }
 0x51f   :  { %1680 = vmatmul.mubr.msk.bf16.vlgmr.msra.gmra.mrb[20].mxu1 %vm265_vm2, %v702_v3 }
 0x520   :  { %1691 = vmatprep.mubr.msk.bf16.mxu1 %vm1857_vm0, %v1856_v1 }
 0x521   :  { %1686 = vmatmul.mubr.msk.bf16.vlgmr.msra.gmra.mrb[24].mxu0 %vm265_vm2, %v752_v4 }
 0x522   :  { %1697 = vmatprep.mubr.msk.bf16.mxu0 %vm1857_vm0, %v1856_v1 }
 0x5e8   :  { %v2116_v7 = vpop.f32.mrb[16].mxu1 }
 0x5e9   :  { %v1669_v8 = vpop.f32.mrb[17].mxu1 }
 0x5ea   :  { %v649_v9 = vpop.f32.mrb[18].mxu1 }
 0x5eb   :  { %v1670_v10 = vpop.f32.mrb[19].mxu1 }
 0x5ec   :  { %v2118_v11 = vpop.f32.mrb[20].mxu0 }
 0x5ed   :  { %v1763_v12 = vpack.i.bf16 %v2118_v11, %v2116_v7  ;;  %v1675_v13 = vpop.f32.mrb[21].mxu0 }
 0x5ee   :  { %v698_v14 = vpop.f32.mrb[22].mxu0 }
 0x5ef   :  { %v1676_v15 = vpop.f32.mrb[23].mxu0 }
 0x5f2   :  { %v745_v17 = vpop.f32.mrb[20].mxu1 }
 0x5f3   :  { %v1681_v18 = vpop.f32.mrb[21].mxu1  ;;  %v801_v20 = vsel %vm265_vm2, %v745_v17, -inf }
 0x5f4   :  { %802 = vmax.xlane.f32.xlu0 %v801_v20  ;;  %v748_v22 = vpop.f32.mrb[22].mxu1  ;;  %v795_v23 = vpop.f32.mrb[24].mxu0 }
 0x5f5   :  { %v1682_v25 = vpop.f32.mrb[23].mxu1  ;;  %v1687_v26 = vpop.f32.mrb[25].mxu0  ;;  %v804_v27 = vsel %vm265_vm2, %v795_v23, -inf }
 0x5f6   :  { %805 = vmax.xlane.f32.xlu1 %v804_v27  ;;  %v798_v28 = vpop.f32.mrb[26].mxu0 }
 0x5f7   :  { %v1688_v30 = vpop.f32.mrb[27].mxu0 }
 0x607   :  { %873 = vrot.lane.b32.xlu1 %v2042_v40, %s1859_s9 }
 0x60b   :  { %923 = vrot.lane.b32.xlu1 %v2013_v19, %s1860_s0 }
 0x60f   :  { %973 = vrot.lane.b32.xlu1 %v2015_v24, %s1860_s0 }
 0x613   :  { %971 = vrot.lane.b32.xlu1 %v2027_v35, %s1860_s0 }
 0x681   :  { %v803_v31 = vpop.xlane.xlu0 %802 }
 0x682   :  { %v807_v32 = vsub.f32 %v745_v17, %v803_v31 }
 0x683   :  { %v806_v33 = vpop.xlane.xlu1 %805 }
 0x684   :  { %v809_v34 = vmul.f32 1.442695, %v807_v32  ;;  %v808_v36 = vsub.f32 %v795_v23, %v806_v33 }
 0x686   :  { %1808 = vpow2.f32 %v809_v34  ;;  %v811_v37 = vmul.f32 1.442695, %v808_v36 }
 0x687   :  { %v874_v38 = vpop.permute.xlu1 %873 }
 0x688   :  { %1810 = vpow2.f32 %v811_v37  ;;  %v879_v41 = vsel %vm385_vm3, %v874_v38, 0 }
 0x689   :  { %1696 = vmatpush3.bf16.msra.mxu0 %v879_v41 }
 0x68a   :  { %1707 = vmatprep.subr.bf16.mxu0 %v1856_v1 }
 0x68b   :  { %v924_v48 = vpop.permute.xlu1 %923 }
 0x68f   :  { %v974_v53 = vpop.permute.xlu1 %973 }
 0x690   :  { %v1809_v19 = vpop.eup %1808  ;;  %v979_v55 = vsel %vm265_vm2, %v974_v53, 0 }
 0x691   :  { %v813_v24 = vsel %vm265_vm2, %v1809_v19, 0.0 }
 0x692   :  { %v1811_v42 = vpop.eup %1810  ;;  %814 = vadd.xlane.f32.xlu0 %v813_v24 }
 0x693   :  { %v816_v35 = vsel %vm265_vm2, %v1811_v42, 0.0  ;;  %v972_v57 = vpop.permute.xlu1 %971 }
 0x696   :  { %817 = vadd.xlane.f32.xlu0 %v816_v35  ;;  %v1785_v35 = vld [vmem:[%s2268_s4 + $0x8] sm:$0xff]  }
 0x6ac   :  { %825 = vrot.lane.b32.xlu0 %v2040_v39, %s1859_s9 }
 0x6b0   :  { %921 = vrot.lane.b32.xlu0 %v2024_v29, %s1860_s0  ;;  %v929_v29 = vsel %vm265_vm2, %v924_v48, 0 }
 0x71f   :  { %v815_v43 = vpop.xlane.xlu0 %814 }
 0x720   :  { %1812 = vrcp.f32 %v815_v43 }
 0x723   :  { %v818_v44 = vpop.xlane.xlu0 %817 }
 0x724   :  { %1814 = vrcp.f32 %v818_v44 }
 0x727   :  { %v826_v45 = vpop.permute.xlu0 %825 }
 0x728   :  { %v831_v46 = vsel %vm385_vm3, %v826_v45, 0 }
 0x729   :  { %1690 = vmatpush3.bf16.msra.mxu1 %v831_v46 }
 0x72a   :  { %v1813_v47 = vpop.eup %1812  ;;  %1701 = vmatprep.subr.bf16.mxu1 %v1856_v1 }
 0x72b   :  { %v821_v49 = vmul.f32 %v1813_v47, %v1809_v19  ;;  %v922_v56 = vpop.permute.xlu0 %921 }
 0x72d   :  { %v823_v50 = vpack.c.bf16 %v821_v49, %v821_v49 }
 0x72e   :  { %v1815_v51 = vpop.eup %1814 }
 0x72f   :  { %v822_v52 = vmul.f32 %v1815_v51, %v1811_v42  ;;  %1692 = vmatmul.mubr.msk.bf16.vlgmr.msra.gmra.mrb[24].mxu1 %vm265_vm2, %v823_v50  ;;  %v1784_v42 = vld [vmem:[%s2268_s4] sm:$0xff]  }
 0x730   :  { %1703 = vmatprep.mubr.msk.bf16.mxu1 %vm1857_vm0, %v1856_v1 }
 0x731   :  { %v824_v54 = vpack.c.bf16 %v822_v52, %v822_v52 }
 0x732   :  { %1702 = vmatpush3.bf16.xpose.msra.mxu1 %v929_v29 }
 0x733   :  { %1698 = vmatmul.mubr.msk.bf16.vlgmr.msra.gmra.mrb[28].mxu0 %vm265_vm2, %v824_v54  ;;  %1713 = vmatprep.subr.bf16.mxu1 %v1856_v1 }
 0x734   :  { %1708 = vmatpush3.bf16.xpose.msra.mxu0 %v979_v55  ;;  %1709 = vmatprep.mubr.msk.bf16.mxu0 %vm1857_vm0, %v1856_v1 }
 0x735   :  { %1719 = vmatprep.subr.bf16.mxu0 %v1856_v1 }
 0x739   :  { %1704 = vmatmul.mubr.msk.bf16.vlgmr.msra.gmra.mrb[28].mxu1 %vm265_vm2, %v922_v56 }
 0x73a   :  { %1715 = vmatprep.mubr.msk.bf16.mxu1 %vm1857_vm0, %v1856_v1 }
 0x73b   :  { %1710 = vmatmul.mubr.msk.bf16.vlgmr.msra.gmra.mrb[32].mxu0 %vm265_vm2, %v972_v57 }
 0x73c   :  { %1721 = vmatprep.mubr.msk.bf16.mxu0 %vm1857_vm0, %v1856_v1 }
 0x802   :  { %v867_v58 = vpop.f32.mrb[24].mxu1 }
 0x803   :  { %v1693_v59 = vpop.f32.mrb[25].mxu1 }
 0x804   :  { %v870_v60 = vpop.f32.mrb[26].mxu1 }
 0x805   :  { %v1694_v61 = vpop.f32.mrb[27].mxu1 }
 0x806   :  { %v915_v62 = vpop.f32.mrb[28].mxu0 }
 0x807   :  { %v1768_v63 = vpack.i.bf16 %v915_v62, %v867_v58  ;;  %v1699_v0 = vpop.f32.mrb[29].mxu0 }
 0x808   :  { %v918_v2 = vpop.f32.mrb[30].mxu0 }
 0x809   :  { %v1700_v3 = vpop.f32.mrb[31].mxu0 }
 0x80c   :  { %v965_v4 = vpop.f32.mrb[28].mxu1 }
 0x80d   :  { %v1705_v8 = vpop.f32.mrb[29].mxu1  ;;  %v1021_v9 = vsel %vm265_vm2, %v965_v4, -inf }
 0x80e   :  { %1022 = vmax.xlane.f32.xlu0 %v1021_v9  ;;  %v968_v10 = vpop.f32.mrb[30].mxu1  ;;  %v1015_v13 = vpop.f32.mrb[32].mxu0 }
 0x80f   :  { %v1706_v14 = vpop.f32.mrb[31].mxu1  ;;  %v1711_v15 = vpop.f32.mrb[33].mxu0  ;;  %v1024_v17 = vsel %vm265_vm2, %v1015_v13, -inf }
 0x810   :  { %1025 = vmax.xlane.f32.xlu1 %v1024_v17  ;;  %v1018_v18 = vpop.f32.mrb[34].mxu0 }
 0x811   :  { %v1712_v20 = vpop.f32.mrb[35].mxu0 }
 0x821   :  { %1093 = vrot.lane.b32.xlu1 %v2042_v40, %s1860_s0 }
 0x825   :  { %1764 = vrot.lane.b32.xlu1 %v1763_v12, %s1861_s30 }
 0x829   :  { %1769 = vrot.lane.b32.xlu1 %v1768_v63, %s1862_s18 }
 0x89b   :  { %v1023_v22 = vpop.xlane.xlu0 %1022 }
 0x89c   :  { %v1027_v23 = vsub.f32 %v965_v4, %v1023_v22  ;;  %v1535_v4 = vld [vmem:[%s2274_s10] ss:$0 sm:$0xff] }
 0x89d   :  { %v1026_v25 = vpop.xlane.xlu1 %1025 }
 0x89e   :  { %v1029_v26 = vmul.f32 1.442695, %v1027_v23  ;;  %v1028_v27 = vsub.f32 %v1015_v13, %v1026_v25 }
 0x8a0   :  { %1816 = vpow2.f32 %v1029_v26  ;;  %v1031_v28 = vmul.f32 1.442695, %v1028_v27 }
 0x8a1   :  { %v1094_v30 = vpop.permute.xlu1 %1093 }
 0x8a2   :  { %1818 = vpow2.f32 %v1031_v28  ;;  %v1099_v31 = vsel %vm385_vm3, %v1094_v30, 0 }
 0x8a3   :  { %1720 = vmatpush3.bf16.msra.mxu0 %v1099_v31 }
 0x8a4   :  { %1733 = vmatprep.subr.bf16.mxu0 %v1856_v1 }
 0x8a5   :  { %v1765_v52 = vpop.permute.xlu1 %1764 }
 0x8a6   :  { %v1767_v29 = vunpack.i.h.bf16 %v1765_v52  ;;  %v1766_v54 = vunpack.i.l.bf16 %v1765_v52 }
 0x8a8   :  { %v1166_v58 = vsel %vm265_vm2, %v2078_v21, %v1767_v29  ;;  %v1165_v59 = vsel %vm265_vm2, %v2076_v16, %v1766_v54 }
 0x8a9   :  { %v1770_v53 = vpop.permute.xlu1 %1769 }
 0x8aa   :  { %v1817_v40 = vpop.eup %1816  ;;  %v1772_v55 = vunpack.i.h.bf16 %v1770_v53  ;;  %v1771_v56 = vunpack.i.l.bf16 %v1770_v53 }
 0x8ab   :  { %v1033_v7 = vsel %vm265_vm2, %v1817_v40, 0.0 }
 0x8ac   :  { %v1819_v11 = vpop.eup %1818  ;;  %1034 = vadd.xlane.f32.xlu0 %v1033_v7  ;;  %v1168_v62 = vsel %vm1167_vm4, %v1165_v59, %v1771_v56  ;;  %v1169_v63 = vsel %vm1167_vm4, %v1166_v58, %v1772_v55  ;;  %v1788_v7 = vld [vmem:[%s2270_s6] sm:$0xff]  }
 0x8ad   :  { %v1036_v12 = vsel %vm265_vm2, %v1819_v11, 0.0 }
 0x8b0   :  { %1037 = vadd.xlane.f32.xlu0 %v1036_v12 }
 0x8c6   :  { %1045 = vrot.lane.b32.xlu0 %v2040_v39, %s1860_s0 }
 0x939   :  { %v1035_v32 = vpop.xlane.xlu0 %1034 }
 0x93a   :  { %1820 = vrcp.f32 %v1035_v32 }
 0x93d   :  { %v1038_v33 = vpop.xlane.xlu0 %1037 }
 0x93e   :  { %1822 = vrcp.f32 %v1038_v33 }
 0x941   :  { %v1046_v34 = vpop.permute.xlu0 %1045 }
 0x942   :  { %v1051_v36 = vsel %vm385_vm3, %v1046_v34, 0 }
 0x943   :  { %1714 = vmatpush3.bf16.msra.mxu1 %v1051_v36 }
 0x944   :  { %v1821_v37 = vpop.eup %1820  ;;  %1725 = vmatprep.subr.bf16.mxu1 %v1856_v1 }
 0x945   :  { %v1041_v38 = vmul.f32 %v1821_v37, %v1817_v40  ;;  %v1787_v40 = vld [vmem:[%s2269_s5 + $0x8] sm:$0xff]  }
 0x947   :  { %v1043_v41 = vpack.c.bf16 %v1041_v38, %v1041_v38 }
 0x948   :  { %v1823_v19 = vpop.eup %1822 }
 0x949   :  { %v1042_v24 = vmul.f32 %v1823_v19, %v1819_v11  ;;  %1716 = vmatmul.mubr.msk.bf16.vlgmr.msra.gmra.mrb[32].mxu1 %vm265_vm2, %v1043_v41  ;;  %v1789_v11 = vld [vmem:[%s2270_s6 + $0x8] sm:$0xff]   ;;  %v1539_v19 = vld [vmem:[%s2277_s13] ss:$0 sm:$0xff] }
 0x94a   :  { %1729 = vmatprep.mubr.msk.bf16.mxu1 %vm1857_vm0, %v1856_v1  ;;  %1726 = vmatpush3.bf16.msra.mxu1 %v1784_v42 }
 0x94b   :  { %v1044_v39 = vpack.c.bf16 %v1042_v24, %v1042_v24  ;;  %1727 = vmatprep.subr.bf16.mxu1 %v1856_v1 }
 0x94d   :  { %1722 = vmatmul.mubr.msk.bf16.vlgmr.msra.gmra.mrb[36].mxu0 %vm265_vm2, %v1044_v39 }
 0x94e   :  { %1737 = vmatprep.mubr.msk.bf16.mxu0 %vm1857_vm0, %v1856_v1  ;;  %1728 = vmatpush3.bf16.msra.mxu1 %v1785_v35  ;;  %v1540_v35 = vld [vmem:[%s2278_s14] ss:$0 sm:$0xff] }
 0x94f   :  { %1741 = vmatprep.subr.bf16.mxu1 %v1856_v1 }
 0xa1c   :  { %v1087_v43 = vpop.f32.mrb[32].mxu1 }
 0xa1d   :  { %v1717_v44 = vpop.f32.mrb[33].mxu1 }
 0xa1e   :  { %v1090_v45 = vpop.f32.mrb[34].mxu1 }
 0xa1f   :  { %v1718_v46 = vpop.f32.mrb[35].mxu1 }
 0xa20   :  { %v1135_v47 = vpop.f32.mrb[36].mxu0 }
 0xa21   :  { %v1773_v48 = vpack.i.bf16 %v1135_v47, %v1087_v43  ;;  %v1723_v49 = vpop.f32.mrb[37].mxu0  ;;  %v1790_v47 = vld [vmem:[%s2270_s6 + $0x10] sm:$0xff]  }
 0xa22   :  { %v1138_v50 = vpop.f32.mrb[38].mxu0  ;;  %v1541_v49 = vld [vmem:[%s2275_s11] ss:$0 sm:$0xff] }
 0xa23   :  { %1774 = vrot.lane.b32.xlu0 %v1773_v48, %s1863_s2  ;;  %v1724_v51 = vpop.f32.mrb[39].mxu0  ;;  %v1791_v48 = vld [vmem:[%s2270_s6 + $0x18] sm:$0xff]   ;;  %s1864_s2 = smov [#allocation2]  }
 0xa24   :  { %s1496_s4 = sshll.u32 %s1864_s2, 4  ;;  %s1497_s4 = int_to_ptr.vmem [resolvable:$true] %s1496_s4 }
 0xa25   :  { %s1832_s22 = scalar_lea.vmem %s1497_s4, 256  ;;  %p1837_p1 = scmp.lt.s32.totalorder %s1497_s4, %s1497_s4 }
 0xa26   :  { %p1833_p0 = scmp.ne.s32.totalorder %s1497_s4, %s1832_s22  ;;  %p1838_p2 = scmp.lt.s32.totalorder %s1832_s22, %s1832_s22 }
 0xa28   :  { %p1839_p3 = por %p1838_p2, %p1837_p1 }
 0xa2a   :  { %p1840_p4 = pnand %p1839_p3, %p1833_p0 }
 0xa95   :  { %v1775_v57 = vpop.permute.xlu0 %1774 }
 0xa96   :  { %v1777_v60 = vunpack.i.h.bf16 %v1775_v57  ;;  %v1776_v61 = vunpack.i.l.bf16 %v1775_v57 }
 0xa98   :  { %v1172_v0 = vsel %vm1170_vm5, %v1169_v63, %v1777_v60  ;;  %v1171_v2 = vsel %vm1170_vm5, %v1168_v62, %v1776_v61 }
 0xa99   :  { %v1173_v3 = vpack.c.bf16 %v1172_v0, %v1171_v2 }
 0xa9b   :  { %1730 = vmatmul.mubr.msk.bf16.vlgmr.msra.gmra.mrb[36].mxu1 %vm84_vm1, %v1173_v3 }
 0xa9c   :  { %1749 = vmatprep.mubr.msk.bf16.mxu1 %vm1857_vm0, %v1856_v1  ;;  %1742 = vmatpush3.bf16.msra.mxu1 %v1788_v7 }
 0xa9d   :  { %1743 = vmatprep.subr.bf16.mxu1 %v1856_v1 }
 0xaa0   :  { %1744 = vmatpush3.bf16.msra.mxu1 %v1789_v11 }
 0xaa1   :  { %1745 = vmatprep.subr.bf16.mxu1 %v1856_v1 }
 0xaa4   :  { %1746 = vmatpush3.bf16.msra.mxu1 %v1790_v47 }
 0xaa5   :  { %1747 = vmatprep.subr.bf16.mxu1 %v1856_v1 }
 0xaa8   :  { %1748 = vmatpush3.bf16.msra.mxu1 %v1791_v48 }
 0xb6e   :  { %v1234_v21 = vpop.f32.mrb[36].mxu1 }
 0xb6f   :  { %v1235_v8 = vadd.f32 %v1535_v4, %v1234_v21  ;;  %v1731_v9 = vpop.f32.mrb[37].mxu1 }
 0xb70   :  { %v1237_v16 = vpop.f32.mrb[38].mxu1 }
 0xb71   :  { %v1238_v10 = vadd.f32 %v1535_v4, %v1237_v16  ;;  %v1732_v13 = vpop.f32.mrb[39].mxu1  ;;  %v1241_v14 = vadd.f32 %v1235_v8, %v1977_v5 }
 0xb73   :  { %v1243_v15 = vsel %vm84_vm1, %v1241_v14, 0.0  ;;  %v1242_v17 = vadd.f32 %v1238_v10, %v1982_v6  ;;  %v1786_v6 = vld [vmem:[%s2269_s5] sm:$0xff]  }
 0xb74   :  { %1244 = vadd.xlane.f32.xlu1 %v1243_v15  ;;  %1734 = vmatpush3.bf16.msra.mxu0 %v1786_v6  ;;  %v1552_v6 = vld [vmem:[%s2280_s16] ss:$0 sm:$0xff] }
 0xb75   :  { %v1246_v18 = vsel %vm84_vm1, %v1242_v17, 0.0  ;;  %1735 = vmatprep.subr.bf16.mxu0 %v1856_v1  ;;  %v1545_v1 = vld [vmem:[%s2276_s12] ss:$0 sm:$0xff] }
 0xb76   :  { %1247 = vadd.xlane.f32.xlu0 %v1246_v18 }
 0xb78   :  { %1736 = vmatpush3.bf16.msra.mxu0 %v1787_v40 }
 0xc01   :  { %v1245_v20 = vpop.xlane.xlu1 %1244 }
 0xc02   :  { %v1250_v22 = vmul.f32 0.03125, %v1245_v20 }
 0xc03   :  { %v1248_v23 = vpop.xlane.xlu0 %1247 }
 0xc04   :  { %v1252_v25 = vsub.f32 %v1241_v14, %v1250_v22  ;;  %v1251_v26 = vmul.f32 0.03125, %v1248_v23 }
 0xc06   :  { %v1253_v27 = vsub.f32 %v1242_v17, %v1251_v26  ;;  %v1254_v28 = vmul.f32 %v1252_v25, %v1252_v25 }
 0xc08   :  { %v1256_v30 = vsel %vm84_vm1, %v1254_v28, 0.0  ;;  %v1255_v31 = vmul.f32 %v1253_v27, %v1253_v27 }
 0xc09   :  { %1257 = vadd.xlane.f32.xlu0 %v1256_v30  ;;  %v1551_v30 = vld [vmem:[%s2279_s15] ss:$0 sm:$0xff] }
 0xc0a   :  { %v1259_v5 = vsel %vm84_vm1, %v1255_v31, 0.0 }
 0xc0d   :  { %1260 = vadd.xlane.f32.xlu0 %v1259_v5 }
 0xc96   :  { %v1258_v12 = vpop.xlane.xlu0 %1257 }
 0xc97   :  { %v1262_v32 = vmul.f32 0.03125, %v1258_v12 }
 0xc99   :  { %v1264_v33 = vadd.f32 1e-12, %v1262_v32 }
 0xc9a   :  { %v1261_v34 = vpop.xlane.xlu0 %1260 }
 0xc9b   :  { %1824 = vrsqrt.f32 %v1264_v33  ;;  %v1263_v36 = vmul.f32 0.03125, %v1261_v34 }
 0xc9d   :  { %v1265_v37 = vadd.f32 1e-12, %v1263_v36 }
 0xc9f   :  { %1826 = vrsqrt.f32 %v1265_v37 }
 0xca5   :  { %v1825_v38 = vpop.eup %1824 }
 0xca6   :  { %v1268_v41 = vmul.f32 %v1825_v38, %v1252_v25 }
 0xca8   :  { %v1277_v39 = vmul.f32 %v1539_v19, %v1268_v41 }
 0xca9   :  { %v1827_v24 = vpop.eup %1826 }
 0xcaa   :  { %v1269_v42 = vmul.f32 %v1827_v24, %v1253_v27  ;;  %v1286_v44 = vadd.f32 %v1540_v35, %v1277_v39 }
 0xcac   :  { %v1278_v43 = vmul.f32 %v1539_v19, %v1269_v42 }
 0xcae   :  { %v1287_v45 = vadd.f32 %v1540_v35, %v1278_v43 }
 0xcb0   :  { %v1288_v46 = vpack.c.bf16 %v1287_v45, %v1286_v44 }
 0xcb2   :  { %1738 = vmatmul.mubr.msk.bf16.vlgmr.msra.gmra.mrb[40].mxu0 %vm84_vm1, %v1288_v46 }
 0xd85   :  { %v1349_v50 = vpop.f32.mrb[40].mxu0 }
 0xd86   :  { %v1350_v51 = vadd.f32 %v1541_v49, %v1349_v50  ;;  %v1739_v52 = vpop.f32.mrb[41].mxu0 }
 0xd87   :  { %v1352_v53 = vpop.f32.mrb[42].mxu0 }
 0xd88   :  { %v1353_v29 = vadd.f32 %v1541_v49, %v1352_v53  ;;  %v1740_v54 = vpop.f32.mrb[43].mxu0  ;;  %v1356_v55 = vmax.f32 %v1350_v51, 0.0 }
 0xd8a   :  { %v1357_v56 = vmax.f32 %v1353_v29, 0.0 }
 0xd8c   :  { %v1358_v57 = vpack.c.bf16 %v1357_v56, %v1356_v55 }
 0xd8e   :  { %1750 = vmatmul.mubr.msk.bf16.vlgmr.msra.gmra.mrb[40].mxu1 %vm1398_vm6, %v1358_v57 }
 0xe61   :  { %v1436_v58 = vpop.f32.mrb[40].mxu1 }
 0xe62   :  { %v1437_v59 = vadd.f32 %v1545_v1, %v1436_v58  ;;  %v1751_v60 = vpop.f32.mrb[41].mxu1 }
 0xe63   :  { %v1439_v61 = vpop.f32.mrb[42].mxu1 }
 0xe64   :  { %v1440_v62 = vadd.f32 %v1545_v1, %v1439_v61  ;;  %v1752_v63 = vpop.f32.mrb[43].mxu1  ;;  %v1443_v0 = vadd.f32 %v1437_v59, %v1286_v44 }
 0xe66   :  { %v1445_v2 = vsel %vm84_vm1, %v1443_v0, 0.0  ;;  %v1444_v3 = vadd.f32 %v1440_v62, %v1287_v45 }
 0xe67   :  { %1446 = vadd.xlane.f32.xlu1 %v1445_v2 }
 0xe68   :  { %v1448_v4 = vsel %vm84_vm1, %v1444_v3, 0.0 }
 0xe69   :  { %1449 = vadd.xlane.f32.xlu0 %v1448_v4 }
 0xef4   :  { %v1447_v21 = vpop.xlane.xlu1 %1446 }
 0xef5   :  { %v1451_v8 = vmul.f32 0.03125, %v1447_v21 }
 0xef6   :  { %v1450_v9 = vpop.xlane.xlu0 %1449 }
 0xef7   :  { %v1453_v16 = vsub.f32 %v1443_v0, %v1451_v8  ;;  %v1452_v10 = vmul.f32 0.03125, %v1450_v9 }
 0xef9   :  { %v1454_v13 = vsub.f32 %v1444_v3, %v1452_v10  ;;  %v1455_v14 = vmul.f32 %v1453_v16, %v1453_v16 }
 0xefb   :  { %v1457_v15 = vsel %vm84_vm1, %v1455_v14, 0.0  ;;  %v1456_v17 = vmul.f32 %v1454_v13, %v1454_v13 }
 0xefc   :  { %1458 = vadd.xlane.f32.xlu1 %v1457_v15 }
 0xefd   :  { %v1460_v18 = vsel %vm84_vm1, %v1456_v17, 0.0 }
 0xefe   :  { %1461 = vadd.xlane.f32.xlu0 %v1460_v18 }
 0xf89   :  { %v1459_v20 = vpop.xlane.xlu1 %1458 }
 0xf8a   :  { %v1463_v22 = vmul.f32 0.03125, %v1459_v20 }
 0xf8b   :  { %v1462_v23 = vpop.xlane.xlu0 %1461 }
 0xf8c   :  { %v1465_v25 = vadd.f32 1e-12, %v1463_v22  ;;  %v1464_v26 = vmul.f32 0.03125, %v1462_v23 }
 0xf8e   :  { %1828 = vrsqrt.f32 %v1465_v25  ;;  %v1466_v27 = vadd.f32 1e-12, %v1464_v26 }
 0xf90   :  { %1830 = vrsqrt.f32 %v1466_v27 }
 0xf98   :  { %v1829_v28 = vpop.eup %1828 }
 0xf99   :  { %v1469_v31 = vmul.f32 %v1829_v28, %v1453_v16 }
 0xf9a   :  { %v1831_v5 = vpop.eup %1830 }
 0xf9b   :  { %v1470_v40 = vmul.f32 %v1831_v5, %v1454_v13  ;;  %v1478_v7 = vmul.f32 %v1551_v30, %v1469_v31 }
 0xf9d   :  { %v1479_v11 = vmul.f32 %v1551_v30, %v1470_v40  ;;  %v1487_v12 = vadd.f32 %v1552_v6, %v1478_v7 }
 0xf9f   :  { %v1488_v32 = vadd.f32 %v1552_v6, %v1479_v11  ;;  %1489 = vst.msk [vmem:[#allocation2] sm:$0xff] %vm84_vm1, %v1487_v12 }
 0xfa1   :  { %1490 = vst.msk [vmem:[#allocation2 + $0x8] sm:$0xff] %vm84_vm1, %v1488_v32 }
 0xfa2   :  { %1843 = shalt.err (!%p1840_p4)
}
 0xfa3   :  { %s1844_s10 = scalar_lea.hbm %s2281_s17, 256 }
 0xfa4   :  { %p1845_p5 = scmp.ne.s32.totalorder %s2281_s17, %s1844_s10  ;;  %p1848_p6 = scmp.lt.u32.totalorder %s1844_s10, %s2281_s17 }
 0xfa6   :  { %p1850_p7 = pnand %p1848_p6, %p1845_p5 }
 0xfa8   :  { %1853 = shalt.err (!%p1850_p7)
}
 0xfa9   :  { %s1865_s26 = smov 128  }
 0xfaa   :  { %1502 = dma.vmem_to_hbm [thread:$0]  %s1497_s4, 256, %s2281_s17, [#allocation3], %s1865_s26, %s1865_s26, %s1861_s30  }
 0xfab   :  { %1854 = dma.done.wait [#allocation3], 256  }
 0xfac   :  { %1855 = vsyncadd [#allocation3], 4294967040 }
 0xfad   :  { %1506 = vsyncpa [#allocation3], 1 }

// kernel: model_fn.2
= control target key start
LH: loop header
LB: loop body
LE: loop exit
PB: predicated region body
PF: predicated region fallthrough
CT: control target
= control target key end

     0   :  { %s2372_s0 = inlined_call_operand.vmem [shape: f32[16,32], index: 0, kind: input, shape index: {}]   ;;  %s2373_s1 = inlined_call_operand.hbm [shape: bf16[32,32], index: 1, kind: input, shape index: {}]   ;;  %s2374_s2 = inlined_call_operand.hbm [shape: bf16[32,32], index: 2, kind: input, shape index: {}]   ;;  %s2375_s3 = inlined_call_operand.hbm [shape: bf16[32,32], index: 3, kind: input, shape index: {}]   ;;  %s2376_s4 = inlined_call_operand.vmem [shape: bf16[32,32], index: 4, kind: input, shape index: {}]   ;;  %s2377_s5 = inlined_call_operand.vmem [shape: bf16[32,64], index: 5, kind: input, shape index: {}]   ;;  %s2378_s6 = inlined_call_operand.vmem [shape: bf16[64,32], index: 6, kind: input, shape index: {}]   ;;  %s2379_s7 = inlined_call_operand.vmem [shape: f32[1,32], index: 7, kind: input, shape index: {}, may-alias: {7,8,9,10,12,14,16}]   ;;  %s2380_s8 = inlined_call_operand.vmem [shape: f32[1,32], index: 8, kind: input, shape index: {}, may-alias: {7,8,9,10,12,14,16}]   ;;  %s2381_s9 = inlined_call_operand.vmem [shape: f32[1,32], index: 9, kind: input, shape index: {}, may-alias: {7,8,9,10,12,14,16}]   ;;  %s2382_s10 = inlined_call_operand.vmem [shape: f32[1,32], index: 10, kind: input, shape index: {}, may-alias: {7,8,9,10,12,14,16}]   ;;  %s2383_s11 = inlined_call_operand.vmem [shape: f32[1,64], index: 11, kind: input, shape index: {}]   ;;  %s2384_s12 = inlined_call_operand.vmem [shape: f32[1,32], index: 12, kind: input, shape index: {}, may-alias: {7,8,9,10,12,14,16}]   ;;  %s2385_s13 = inlined_call_operand.vmem [shape: f32[1,32], index: 13, kind: input, shape index: {}, may-alias: {13,15}]   ;;  %s2386_s14 = inlined_call_operand.vmem [shape: f32[1,32], index: 14, kind: input, shape index: {}, may-alias: {7,8,9,10,12,14,16}]   ;;  %s2387_s15 = inlined_call_operand.vmem [shape: f32[1,32], index: 15, kind: input, shape index: {}, may-alias: {13,15}]   ;;  %s2388_s16 = inlined_call_operand.vmem [shape: f32[1,32], index: 16, kind: input, shape index: {}, may-alias: {7,8,9,10,12,14,16}]   ;;  %s2389_s17 = inlined_call_operand.vmem [shape: f32[16,32], index: 17, kind: output, shape index: {}]  }
   0x1   :  { %2392 = sst [smem:[#allocation9_spill]] %s2372_s0 }
   0x2   :  { %2393 = sst [smem:[#allocation10_spill]] %s2373_s1 }
   0x3   :  { %22 = vsyncpa [#allocation3], 0 }
   0x4   :  { %23 = vsyncpa [#allocation5], 0  ;;  %s1935_s24 = smov [#allocation4]   ;;  %s1936_s26 = smov [#allocation2]  }
   0x5   :  { %s43_s25 = sshll.u32 %s1935_s24, 4  ;;  %s31_s27 = sshll.u32 %s1936_s26, 4  ;;  %s44_s25 = int_to_ptr.vmem [resolvable:$true] %s43_s25  ;;  %s2038_s27 = int_to_ptr.vmem [resolvable:$true] %s31_s27 }
   0x6   :  { %s1865_s0 = scalar_lea.hbm %s2374_s2, 256 }
   0x7   :  { %p1866_p0 = scmp.ne.s32.totalorder %s2374_s2, %s1865_s0  ;;  %p1869_p1 = scmp.lt.u32.totalorder %s1865_s0, %s2374_s2 }
   0x9   :  { %p1871_p2 = pnand %p1869_p1, %p1866_p0 }
   0xb   :  { %1874 = shalt.err (!%p1871_p2)
}
   0xc   :  { %s1875_s20 = scalar_lea.vmem %s44_s25, 256  ;;  %p1880_p4 = scmp.lt.s32.totalorder %s44_s25, %s44_s25 }
   0xd   :  { %p1876_p3 = scmp.ne.s32.totalorder %s44_s25, %s1875_s20  ;;  %p1881_p5 = scmp.lt.s32.totalorder %s1875_s20, %s1875_s20 }
   0xf   :  { %p1882_p6 = por %p1881_p5, %p1880_p4 }
  0x11   :  { %p1883_p7 = pnand %p1882_p6, %p1876_p3 }
  0x13   :  { %1886 = shalt.err (!%p1883_p7)
}
  0x14   :  { %s1937_s21 = smov 64   ;;  %s1938_s22 = smov 4  }
  0x15   :  { %49 = dma.hbm_to_vmem [thread:$0]  %s2374_s2, 256, %s44_s25, [#allocation5], %s1937_s21, %s1937_s21, %s1938_s22  }
  0x16   :  { %s2394_s29 = sld [smem:[#allocation10_spill]] }
  0x1c   :  { %s1887_s0 = scalar_lea.hbm %s2394_s29, 256 }
  0x1d   :  { %p1888_p8 = scmp.ne.s32.totalorder %s2394_s29, %s1887_s0  ;;  %p1891_p9 = scmp.lt.u32.totalorder %s1887_s0, %s2394_s29 }
  0x1f   :  { %p1893_p10 = pnand %p1891_p9, %p1888_p8 }
  0x21   :  { %1896 = shalt.err (!%p1893_p10)
}
  0x22   :  { %s1897_s20 = scalar_lea.vmem %s2038_s27, 256  ;;  %p1902_p12 = scmp.lt.s32.totalorder %s2038_s27, %s2038_s27 }
  0x23   :  { %p1898_p11 = scmp.ne.s32.totalorder %s2038_s27, %s1897_s20  ;;  %p1903_p13 = scmp.lt.s32.totalorder %s1897_s20, %s1897_s20 }
  0x25   :  { %p1904_p0 = por %p1903_p13, %p1902_p12 }
  0x27   :  { %p1905_p1 = pnand %p1904_p0, %p1898_p11 }
  0x29   :  { %1908 = shalt.err (!%p1905_p1)
}
  0x2a   :  { %37 = dma.hbm_to_vmem [thread:$0]  %s2394_s29, 256, %s2038_s27, [#allocation3], %s1937_s21, %s1937_s21, %s1938_s22  }
  0x2b   :  { %s1939_s23 = smov [#allocation6]   ;;  %s1909_s0 = scalar_lea.hbm %s2375_s3, 256 }
  0x2c   :  { %s55_s24 = sshll.u32 %s1939_s23, 4  ;;  %p1910_p2 = scmp.ne.s32.totalorder %s2375_s3, %s1909_s0  ;;  %s56_s24 = int_to_ptr.vmem [resolvable:$true] %s55_s24 }
  0x2d   :  { %p1913_p3 = scmp.lt.u32.totalorder %s1909_s0, %s2375_s3 }
  0x2f   :  { %p1915_p4 = pnand %p1913_p3, %p1910_p2 }
  0x31   :  { %1918 = shalt.err (!%p1915_p4)
}
  0x32   :  { %s1919_s20 = scalar_lea.vmem %s56_s24, 256  ;;  %p1924_p6 = scmp.lt.s32.totalorder %s56_s24, %s56_s24 }
  0x33   :  { %p1920_p5 = scmp.ne.s32.totalorder %s56_s24, %s1919_s20  ;;  %p1925_p7 = scmp.lt.s32.totalorder %s1919_s20, %s1919_s20 }
  0x35   :  { %p1926_p8 = por %p1925_p7, %p1924_p6 }
  0x37   :  { %p1927_p9 = pnand %p1926_p8, %p1920_p5 }
  0x39   :  { %1930 = shalt.err (!%p1927_p9)
}
  0x3a   :  { %61 = dma.hbm_to_vmem [thread:$0]  %s2375_s3, 256, %s56_s24, [#allocation5], %s1937_s21, %s1937_s21, %s1938_s22  }
  0x3b   :  { %1931 = dma.done.wait [#allocation3], 256  }
  0x3c   :  { %1932 = vsyncadd [#allocation3], 4294967040 }
  0x3d   :  { %1933 = dma.done.wait [#allocation5], 512  }
  0x3e   :  { %1934 = vsyncadd [#allocation5], 4294966784  ;;  %v1940_v0 = vmov 0.0   ;;  %vm1941_vm0 = vmmov 0   ;;  %v1811_v1 = vld [vmem:[#allocation4] sm:$0xff]   ;;  %v1812_v2 = vld [vmem:[#allocation2] sm:$0xff]  }
  0x3f   :  { %1643 = vmatprep.subr.bf16.mxu1 %v1940_v0  ;;  %1635 = vmatprep.subr.bf16.mxu0 %v1940_v0  ;;  %v1813_v3 = vld [vmem:[#allocation4 + $0x8] sm:$0xff]   ;;  %v1814_v4 = vld [vmem:[#allocation2 + $0x8] sm:$0xff]   ;;  %s2395_s22 = sld [smem:[#allocation9_spill]]  ;;  %vm124_vm1 = vcmask 261120   ;;  %v1815_v8 = vld [vmem:[#allocation6] sm:$0xff]   ;;  %vm305_vm2 = vcmask 64512  }
  0x40   :  { %1647 = vmatprep.mubr.msk.bf16.mxu1 %vm1941_vm0, %v1940_v0  ;;  %1639 = vmatprep.mubr.msk.bf16.mxu0 %vm1941_vm0, %v1940_v0  ;;  %v1816_v9 = vld [vmem:[#allocation6 + $0x8] sm:$0xff]   ;;  %v1541_v10 = vld [vmem:[%s2380_s8] ss:$0 sm:$0xff]  ;;  %vm425_vm3 = vcmask 1043456   ;;  %s1944_s30 = smov 104   ;;  %s1945_s18 = smov 8  }
  0x41   :  { %1644 = vmatpush3.bf16.msra.mxu1 %v1811_v1  ;;  %1636 = vmatpush3.bf16.msra.mxu0 %v1812_v2  ;;  %v1537_v11 = vld [vmem:[%s2379_s7] ss:$0 sm:$0xff]  ;;  %s1942_s7 = smov 120   ;;  %s1946_s19 = smov 16   ;;  %vm1207_vm4 = vcmask 130048   ;;  %vm1210_vm5 = vcmask 195584  }
  0x42   :  { %1645 = vmatprep.subr.bf16.mxu1 %v1940_v0  ;;  %1637 = vmatprep.subr.bf16.mxu0 %v1940_v0  ;;  %v1545_v36 = vld [vmem:[%s2381_s9] ss:$0 sm:$0xff]  ;;  %s1943_s9 = smov 112   ;;  %s1947_s3 = smov 24   ;;  %vm1438_vm6 = vcmask 523264  }
  0x45   :  { %v2101_v5 = vld [vmem:[%s2395_s22] sm:$0xff]  ;;  %v2106_v6 = vld [vmem:[%s2395_s22 + $0x8] sm:$0xff]  ;;  %1646 = vmatpush3.bf16.msra.mxu1 %v1813_v3  ;;  %1638 = vmatpush3.bf16.msra.mxu0 %v1814_v4 }
  0x46   :  { %v100_v7 = vpack.c.bf16 %v2106_v6, %v2101_v5  ;;  %1659 = vmatprep.subr.bf16.mxu1 %v1940_v0  ;;  %1651 = vmatprep.subr.bf16.mxu0 %v1940_v0 }
  0x48   :  { %1648 = vmatmul.mubr.msk.bf16.vlgmr.msra.gmra.mrb[0].mxu1 %vm124_vm1, %v100_v7  ;;  %1640 = vmatmul.mubr.msk.bf16.vlgmr.msra.gmra.mrb[0].mxu0 %vm124_vm1, %v100_v7 }
  0x49   :  { %1661 = vmatprep.mubr.msk.bf16.mxu1 %vm1941_vm0, %v1940_v0  ;;  %1652 = vmatpush3.bf16.msra.mxu0 %v1815_v8 }
  0x4a   :  { %1655 = vmatprep.mubr.msk.bf16.mxu0 %vm1941_vm0, %v1940_v0  ;;  %1653 = vmatprep.subr.bf16.mxu0 %v1940_v0 }
  0x4d   :  { %1654 = vmatpush3.bf16.msra.mxu0 %v1816_v9 }
  0x4e   :  { %1665 = vmatprep.subr.bf16.mxu0 %v1940_v0 }
  0x50   :  { %1656 = vmatmul.mubr.msk.bf16.vlgmr.msra.gmra.mrb[4].mxu0 %vm124_vm1, %v100_v7 }
  0x51   :  { %1667 = vmatprep.mubr.msk.bf16.mxu0 %vm1941_vm0, %v1940_v0 }
 0x11b   :  { %v228_v12 = vpop.f32.mrb[0].mxu1  ;;  %v162_v15 = vpop.f32.mrb[0].mxu0 }
 0x11c   :  { %v229_v13 = vadd.f32 %v1541_v10, %v228_v12  ;;  %v1649_v14 = vpop.f32.mrb[1].mxu1  ;;  %v163_v17 = vadd.f32 %v1537_v11, %v162_v15  ;;  %v1641_v18 = vpop.f32.mrb[1].mxu0 }
 0x11d   :  { %v231_v16 = vpop.f32.mrb[2].mxu1  ;;  %v165_v22 = vpop.f32.mrb[2].mxu0 }
 0x11e   :  { %v2129_v19 = vpack.c.bf16 %v229_v13, %v229_v13  ;;  %v232_v20 = vadd.f32 %v1541_v10, %v231_v16  ;;  %v1650_v21 = vpop.f32.mrb[3].mxu1  ;;  %v1642_v23 = vpop.f32.mrb[3].mxu0  ;;  %v169_v25 = vmul.f32 0.35355338, %v163_v17  ;;  %v166_v26 = vadd.f32 %v1537_v11, %v165_v22 }
 0x120   :  { %v2131_v24 = vpack.c.bf16 %v232_v20, %v232_v20  ;;  %v310_v27 = vsel %vm305_vm2, %v2129_v19, 0  ;;  %v2140_v29 = vpack.c.bf16 %v169_v25, %v169_v25  ;;  %v170_v30 = vmul.f32 0.35355338, %v166_v26 }
 0x121   :  { %1660 = vmatpush3.bf16.xpose.msra.mxu1 %v310_v27 }
 0x122   :  { %571 = vrot.lane.b32.xlu1 %v2131_v24, %s1942_s7  ;;  %v356_v28 = vsel %vm305_vm2, %v2131_v24, 0  ;;  %1671 = vmatprep.subr.bf16.mxu1 %v1940_v0  ;;  %v2143_v35 = vpack.c.bf16 %v170_v30, %v170_v30 }
 0x123   :  { %1666 = vmatpush3.bf16.xpose.msra.mxu0 %v356_v28  ;;  %v292_v31 = vpop.f32.mrb[4].mxu0 }
 0x124   :  { %1677 = vmatprep.subr.bf16.mxu0 %v1940_v0  ;;  %v1657_v32 = vpop.f32.mrb[5].mxu0  ;;  %v293_v37 = vadd.f32 %v1545_v36, %v292_v31 }
 0x125   :  { %v295_v33 = vpop.f32.mrb[6].mxu0 }
 0x126   :  { %v1658_v34 = vpop.f32.mrb[7].mxu0  ;;  %v296_v38 = vadd.f32 %v1545_v36, %v295_v33  ;;  %v2156_v39 = vpack.c.bf16 %v293_v37, %v293_v37 }
 0x128   :  { %1662 = vmatmul.mubr.msk.bf16.vlgmr.msra.gmra.mrb[4].mxu1 %vm305_vm2, %v2140_v29  ;;  %v2158_v40 = vpack.c.bf16 %v296_v38, %v296_v38  ;;  %v427_v41 = vsel %vm425_vm3, %v2156_v39, 0 }
 0x129   :  { %1673 = vmatprep.mubr.msk.bf16.mxu1 %vm1941_vm0, %v1940_v0  ;;  %1672 = vmatpush3.bf16.msra.mxu1 %v427_v41 }
 0x12a   :  { %1668 = vmatmul.mubr.msk.bf16.vlgmr.msra.gmra.mrb[8].mxu0 %vm305_vm2, %v2143_v35  ;;  %v473_v42 = vsel %vm425_vm3, %v2158_v40, 0  ;;  %1683 = vmatprep.subr.bf16.mxu1 %v1940_v0 }
 0x12b   :  { %1679 = vmatprep.mubr.msk.bf16.mxu0 %vm1941_vm0, %v1940_v0  ;;  %1678 = vmatpush3.bf16.msra.mxu0 %v473_v42 }
 0x12c   :  { %1689 = vmatprep.subr.bf16.mxu0 %v1940_v0 }
 0x194   :  { %v572_v63 = vpop.permute.xlu1 %571 }
 0x195   :  { %v577_v13 = vsel %vm305_vm2, %v572_v63, 0 }
 0x1fb   :  { %v346_v43 = vpop.f32.mrb[4].mxu1 }
 0x1fc   :  { %v1663_v44 = vpop.f32.mrb[5].mxu1  ;;  %v398_v45 = vsel %vm305_vm2, %v346_v43, -inf }
 0x1fd   :  { %399 = vmax.xlane.f32.xlu0 %v398_v45  ;;  %v349_v46 = vpop.f32.mrb[6].mxu1  ;;  %v392_v47 = vpop.f32.mrb[8].mxu0 }
 0x1fe   :  { %v1664_v48 = vpop.f32.mrb[7].mxu1  ;;  %v1669_v49 = vpop.f32.mrb[9].mxu0  ;;  %v401_v52 = vsel %vm305_vm2, %v392_v47, -inf }
 0x1ff   :  { %v395_v50 = vpop.f32.mrb[10].mxu0 }
 0x200   :  { %v1670_v51 = vpop.f32.mrb[11].mxu0 }
 0x201   :  { %402 = vmax.xlane.f32.xlu0 %v401_v52 }
 0x217   :  { %519 = vrot.lane.b32.xlu0 %v2129_v19, %s1942_s7 }
 0x28a   :  { %v400_v53 = vpop.xlane.xlu0 %399 }
 0x28b   :  { %v404_v54 = vsub.f32 %v346_v43, %v400_v53 }
 0x28d   :  { %v406_v55 = vmul.f32 1.442695, %v404_v54 }
 0x28e   :  { %v403_v56 = vpop.xlane.xlu0 %402 }
 0x28f   :  { %1825 = vpow2.f32 %v406_v55  ;;  %v405_v57 = vsub.f32 %v392_v47, %v403_v56 }
 0x291   :  { %v408_v58 = vmul.f32 1.442695, %v405_v57 }
 0x292   :  { %v520_v7 = vpop.permute.xlu0 %519 }
 0x293   :  { %1827 = vpow2.f32 %v408_v58  ;;  %v525_v10 = vsel %vm305_vm2, %v520_v7, 0 }
 0x299   :  { %v1826_v59 = vpop.eup %1825 }
 0x29a   :  { %v410_v60 = vsel %vm305_vm2, %v1826_v59, 0.0 }
 0x29b   :  { %411 = vadd.xlane.f32.xlu1 %v410_v60 }
 0x29d   :  { %v1828_v61 = vpop.eup %1827 }
 0x29e   :  { %v413_v62 = vsel %vm305_vm2, %v1828_v61, 0.0 }
 0x29f   :  { %414 = vadd.xlane.f32.xlu1 %v413_v62 }
 0x2b0   :  { %516 = vrot.lane.b32.xlu1 %v2140_v29, %s1942_s7 }
 0x2b4   :  { %568 = vrot.lane.b32.xlu1 %v2143_v35, %s1942_s7 }
 0x328   :  { %v412_v1 = vpop.xlane.xlu1 %411 }
 0x329   :  { %1829 = vrcp.f32 %v412_v1 }
 0x32c   :  { %v415_v2 = vpop.xlane.xlu1 %414 }
 0x32d   :  { %1831 = vrcp.f32 %v415_v2 }
 0x330   :  { %v517_v14 = vpop.permute.xlu1 %516 }
 0x333   :  { %v1830_v3 = vpop.eup %1829 }
 0x334   :  { %v418_v4 = vmul.f32 %v1830_v3, %v1826_v59  ;;  %v569_v15 = vpop.permute.xlu1 %568 }
 0x336   :  { %v420_v8 = vpack.c.bf16 %v418_v4, %v418_v4 }
 0x337   :  { %v1832_v9 = vpop.eup %1831 }
 0x338   :  { %v419_v11 = vmul.f32 %v1832_v9, %v1828_v61  ;;  %1674 = vmatmul.mubr.msk.bf16.vlgmr.msra.gmra.mrb[8].mxu1 %vm305_vm2, %v420_v8 }
 0x339   :  { %1684 = vmatpush3.bf16.xpose.msra.mxu1 %v525_v10  ;;  %1685 = vmatprep.mubr.msk.bf16.mxu1 %vm1941_vm0, %v1940_v0 }
 0x33a   :  { %v421_v12 = vpack.c.bf16 %v419_v11, %v419_v11  ;;  %1695 = vmatprep.subr.bf16.mxu1 %v1940_v0 }
 0x33c   :  { %1680 = vmatmul.mubr.msk.bf16.vlgmr.msra.gmra.mrb[12].mxu0 %vm305_vm2, %v421_v12 }
 0x33d   :  { %1690 = vmatpush3.bf16.xpose.msra.mxu0 %v577_v13  ;;  %1691 = vmatprep.mubr.msk.bf16.mxu0 %vm1941_vm0, %v1940_v0 }
 0x33e   :  { %1701 = vmatprep.subr.bf16.mxu0 %v1940_v0 }
 0x340   :  { %1686 = vmatmul.mubr.msk.bf16.vlgmr.msra.gmra.mrb[12].mxu1 %vm305_vm2, %v517_v14 }
 0x341   :  { %1697 = vmatprep.mubr.msk.bf16.mxu1 %vm1941_vm0, %v1940_v0 }
 0x344   :  { %1692 = vmatmul.mubr.msk.bf16.vlgmr.msra.gmra.mrb[16].mxu0 %vm305_vm2, %v569_v15 }
 0x345   :  { %1703 = vmatprep.mubr.msk.bf16.mxu0 %vm1941_vm0, %v1940_v0 }
 0x40b   :  { %v2192_v16 = vpop.f32.mrb[8].mxu1 }
 0x40c   :  { %v1675_v17 = vpop.f32.mrb[9].mxu1 }
 0x40d   :  { %v466_v18 = vpop.f32.mrb[10].mxu1 }
 0x40e   :  { %v1676_v20 = vpop.f32.mrb[11].mxu1 }
 0x40f   :  { %v2194_v21 = vpop.f32.mrb[12].mxu0 }
 0x410   :  { %v1681_v22 = vpop.f32.mrb[13].mxu0 }
 0x411   :  { %v512_v23 = vpop.f32.mrb[14].mxu0 }
 0x412   :  { %v1682_v25 = vpop.f32.mrb[15].mxu0 }
 0x413   :  { %v561_v26 = vpop.f32.mrb[12].mxu1 }
 0x414   :  { %v1687_v27 = vpop.f32.mrb[13].mxu1  ;;  %v619_v28 = vsel %vm305_vm2, %v561_v26, -inf }
 0x415   :  { %620 = vmax.xlane.f32.xlu0 %v619_v28  ;;  %v564_v30 = vpop.f32.mrb[14].mxu1 }
 0x416   :  { %v1688_v31 = vpop.f32.mrb[15].mxu1 }
 0x417   :  { %v613_v32 = vpop.f32.mrb[16].mxu0 }
 0x418   :  { %v1693_v33 = vpop.f32.mrb[17].mxu0  ;;  %v622_v34 = vsel %vm305_vm2, %v613_v32, -inf }
 0x419   :  { %623 = vmax.xlane.f32.xlu1 %v622_v34  ;;  %v616_v36 = vpop.f32.mrb[18].mxu0 }
 0x41a   :  { %v1694_v37 = vpop.f32.mrb[19].mxu0 }
 0x42a   :  { %693 = vrot.lane.b32.xlu1 %v2158_v40, %s1942_s7 }
 0x42e   :  { %743 = vrot.lane.b32.xlu1 %v2129_v19, %s1943_s9 }
 0x432   :  { %793 = vrot.lane.b32.xlu1 %v2131_v24, %s1943_s9 }
 0x436   :  { %791 = vrot.lane.b32.xlu1 %v2143_v35, %s1943_s9 }
 0x4a2   :  { %v621_v38 = vpop.xlane.xlu0 %620 }
 0x4a3   :  { %v625_v41 = vsub.f32 %v561_v26, %v621_v38 }
 0x4a5   :  { %v627_v42 = vmul.f32 1.442695, %v625_v41 }
 0x4a6   :  { %v624_v43 = vpop.xlane.xlu1 %623 }
 0x4a7   :  { %1833 = vpow2.f32 %v627_v42  ;;  %v626_v44 = vsub.f32 %v613_v32, %v624_v43 }
 0x4a9   :  { %v629_v45 = vmul.f32 1.442695, %v626_v44 }
 0x4aa   :  { %v694_v46 = vpop.permute.xlu1 %693 }
 0x4ab   :  { %1835 = vpow2.f32 %v629_v45  ;;  %v699_v47 = vsel %vm425_vm3, %v694_v46, 0 }
 0x4ac   :  { %1702 = vmatpush3.bf16.msra.mxu0 %v699_v47 }
 0x4ad   :  { %1713 = vmatprep.subr.bf16.mxu0 %v1940_v0 }
 0x4ae   :  { %v744_v57 = vpop.permute.xlu1 %743 }
 0x4af   :  { %v749_v63 = vsel %vm305_vm2, %v744_v57, 0 }
 0x4b1   :  { %v1834_v48 = vpop.eup %1833 }
 0x4b2   :  { %v631_v49 = vsel %vm305_vm2, %v1834_v48, 0.0  ;;  %v794_v62 = vpop.permute.xlu1 %793 }
 0x4b3   :  { %632 = vadd.xlane.f32.xlu0 %v631_v49  ;;  %v799_v2 = vsel %vm305_vm2, %v794_v62, 0 }
 0x4b5   :  { %v1836_v50 = vpop.eup %1835 }
 0x4b6   :  { %v634_v51 = vsel %vm305_vm2, %v1836_v50, 0.0  ;;  %v792_v4 = vpop.permute.xlu1 %791 }
 0x4b7   :  { %635 = vadd.xlane.f32.xlu0 %v634_v51 }
 0x4cd   :  { %644 = vrot.lane.b32.xlu0 %v2156_v39, %s1942_s7 }
 0x4d1   :  { %741 = vrot.lane.b32.xlu0 %v2140_v29, %s1943_s9 }
 0x540   :  { %v633_v52 = vpop.xlane.xlu0 %632 }
 0x541   :  { %1837 = vrcp.f32 %v633_v52 }
 0x544   :  { %v636_v53 = vpop.xlane.xlu0 %635 }
 0x545   :  { %1839 = vrcp.f32 %v636_v53 }
 0x548   :  { %v645_v54 = vpop.permute.xlu0 %644 }
 0x549   :  { %v650_v55 = vsel %vm425_vm3, %v645_v54, 0 }
 0x54a   :  { %1696 = vmatpush3.bf16.msra.mxu1 %v650_v55 }
 0x54b   :  { %v1838_v56 = vpop.eup %1837  ;;  %1707 = vmatprep.subr.bf16.mxu1 %v1940_v0 }
 0x54c   :  { %v639_v58 = vmul.f32 %v1838_v56, %v1834_v48  ;;  %v742_v3 = vpop.permute.xlu0 %741 }
 0x54e   :  { %v641_v59 = vpack.c.bf16 %v639_v58, %v639_v58 }
 0x54f   :  { %v1840_v60 = vpop.eup %1839 }
 0x550   :  { %v640_v61 = vmul.f32 %v1840_v60, %v1836_v50  ;;  %1698 = vmatmul.mubr.msk.bf16.vlgmr.msra.gmra.mrb[16].mxu1 %vm305_vm2, %v641_v59 }
 0x551   :  { %1709 = vmatprep.mubr.msk.bf16.mxu1 %vm1941_vm0, %v1940_v0 }
 0x552   :  { %v642_v1 = vpack.c.bf16 %v640_v61, %v640_v61 }
 0x553   :  { %1708 = vmatpush3.bf16.xpose.msra.mxu1 %v749_v63 }
 0x554   :  { %1704 = vmatmul.mubr.msk.bf16.vlgmr.msra.gmra.mrb[20].mxu0 %vm305_vm2, %v642_v1  ;;  %1719 = vmatprep.subr.bf16.mxu1 %v1940_v0 }
 0x555   :  { %1714 = vmatpush3.bf16.xpose.msra.mxu0 %v799_v2  ;;  %1715 = vmatprep.mubr.msk.bf16.mxu0 %vm1941_vm0, %v1940_v0 }
 0x556   :  { %1725 = vmatprep.subr.bf16.mxu0 %v1940_v0 }
 0x55a   :  { %1710 = vmatmul.mubr.msk.bf16.vlgmr.msra.gmra.mrb[20].mxu1 %vm305_vm2, %v742_v3 }
 0x55b   :  { %1721 = vmatprep.mubr.msk.bf16.mxu1 %vm1941_vm0, %v1940_v0 }
 0x55c   :  { %1716 = vmatmul.mubr.msk.bf16.vlgmr.msra.gmra.mrb[24].mxu0 %vm305_vm2, %v792_v4 }
 0x55d   :  { %1727 = vmatprep.mubr.msk.bf16.mxu0 %vm1941_vm0, %v1940_v0 }
 0x623   :  { %v2232_v7 = vpop.f32.mrb[16].mxu1 }
 0x624   :  { %v1699_v8 = vpop.f32.mrb[17].mxu1 }
 0x625   :  { %v689_v9 = vpop.f32.mrb[18].mxu1 }
 0x626   :  { %v1700_v10 = vpop.f32.mrb[19].mxu1 }
 0x627   :  { %v2234_v11 = vpop.f32.mrb[20].mxu0 }
 0x628   :  { %v1796_v12 = vpack.i.bf16 %v2234_v11, %v2232_v7  ;;  %v1705_v13 = vpop.f32.mrb[21].mxu0 }
 0x629   :  { %v738_v14 = vpop.f32.mrb[22].mxu0 }
 0x62a   :  { %v1706_v15 = vpop.f32.mrb[23].mxu0 }
 0x62d   :  { %v785_v17 = vpop.f32.mrb[20].mxu1 }
 0x62e   :  { %v1711_v18 = vpop.f32.mrb[21].mxu1  ;;  %v841_v20 = vsel %vm305_vm2, %v785_v17, -inf }
 0x62f   :  { %842 = vmax.xlane.f32.xlu0 %v841_v20  ;;  %v788_v22 = vpop.f32.mrb[22].mxu1  ;;  %v835_v23 = vpop.f32.mrb[24].mxu0 }
 0x630   :  { %v1712_v25 = vpop.f32.mrb[23].mxu1  ;;  %v1717_v26 = vpop.f32.mrb[25].mxu0  ;;  %v844_v27 = vsel %vm305_vm2, %v835_v23, -inf }
 0x631   :  { %845 = vmax.xlane.f32.xlu1 %v844_v27  ;;  %v838_v28 = vpop.f32.mrb[26].mxu0 }
 0x632   :  { %v1718_v30 = vpop.f32.mrb[27].mxu0 }
 0x642   :  { %913 = vrot.lane.b32.xlu1 %v2158_v40, %s1943_s9 }
 0x646   :  { %963 = vrot.lane.b32.xlu1 %v2129_v19, %s1944_s30 }
 0x64a   :  { %1013 = vrot.lane.b32.xlu1 %v2131_v24, %s1944_s30 }
 0x64e   :  { %1011 = vrot.lane.b32.xlu1 %v2143_v35, %s1944_s30 }
 0x6bc   :  { %v843_v31 = vpop.xlane.xlu0 %842 }
 0x6bd   :  { %v847_v32 = vsub.f32 %v785_v17, %v843_v31 }
 0x6be   :  { %v846_v33 = vpop.xlane.xlu1 %845 }
 0x6bf   :  { %v849_v34 = vmul.f32 1.442695, %v847_v32  ;;  %v848_v36 = vsub.f32 %v835_v23, %v846_v33 }
 0x6c1   :  { %1841 = vpow2.f32 %v849_v34  ;;  %v851_v37 = vmul.f32 1.442695, %v848_v36 }
 0x6c2   :  { %v914_v38 = vpop.permute.xlu1 %913 }
 0x6c3   :  { %1843 = vpow2.f32 %v851_v37  ;;  %v919_v41 = vsel %vm425_vm3, %v914_v38, 0 }
 0x6c4   :  { %1726 = vmatpush3.bf16.msra.mxu0 %v919_v41 }
 0x6c5   :  { %1737 = vmatprep.subr.bf16.mxu0 %v1940_v0 }
 0x6c6   :  { %v964_v48 = vpop.permute.xlu1 %963 }
 0x6ca   :  { %v1014_v53 = vpop.permute.xlu1 %1013 }
 0x6cb   :  { %v1842_v19 = vpop.eup %1841  ;;  %v1019_v55 = vsel %vm305_vm2, %v1014_v53, 0 }
 0x6cc   :  { %v853_v24 = vsel %vm305_vm2, %v1842_v19, 0.0 }
 0x6cd   :  { %v1844_v42 = vpop.eup %1843  ;;  %854 = vadd.xlane.f32.xlu0 %v853_v24 }
 0x6ce   :  { %v856_v35 = vsel %vm305_vm2, %v1844_v42, 0.0  ;;  %v1012_v57 = vpop.permute.xlu1 %1011 }
 0x6d1   :  { %857 = vadd.xlane.f32.xlu0 %v856_v35  ;;  %v1818_v35 = vld [vmem:[%s2376_s4 + $0x8] sm:$0xff]  }
 0x6e7   :  { %865 = vrot.lane.b32.xlu0 %v2156_v39, %s1943_s9 }
 0x6eb   :  { %961 = vrot.lane.b32.xlu0 %v2140_v29, %s1944_s30  ;;  %v969_v29 = vsel %vm305_vm2, %v964_v48, 0 }
 0x75a   :  { %v855_v43 = vpop.xlane.xlu0 %854 }
 0x75b   :  { %1845 = vrcp.f32 %v855_v43 }
 0x75e   :  { %v858_v44 = vpop.xlane.xlu0 %857 }
 0x75f   :  { %1847 = vrcp.f32 %v858_v44 }
 0x762   :  { %v866_v45 = vpop.permute.xlu0 %865 }
 0x763   :  { %v871_v46 = vsel %vm425_vm3, %v866_v45, 0 }
 0x764   :  { %1720 = vmatpush3.bf16.msra.mxu1 %v871_v46 }
 0x765   :  { %v1846_v47 = vpop.eup %1845  ;;  %1731 = vmatprep.subr.bf16.mxu1 %v1940_v0 }
 0x766   :  { %v861_v49 = vmul.f32 %v1846_v47, %v1842_v19  ;;  %v962_v56 = vpop.permute.xlu0 %961 }
 0x768   :  { %v863_v50 = vpack.c.bf16 %v861_v49, %v861_v49 }
 0x769   :  { %v1848_v51 = vpop.eup %1847 }
 0x76a   :  { %v862_v52 = vmul.f32 %v1848_v51, %v1844_v42  ;;  %1722 = vmatmul.mubr.msk.bf16.vlgmr.msra.gmra.mrb[24].mxu1 %vm305_vm2, %v863_v50  ;;  %v1817_v42 = vld [vmem:[%s2376_s4] sm:$0xff]  }
 0x76b   :  { %1733 = vmatprep.mubr.msk.bf16.mxu1 %vm1941_vm0, %v1940_v0 }
 0x76c   :  { %v864_v54 = vpack.c.bf16 %v862_v52, %v862_v52 }
 0x76d   :  { %1732 = vmatpush3.bf16.xpose.msra.mxu1 %v969_v29 }
 0x76e   :  { %1728 = vmatmul.mubr.msk.bf16.vlgmr.msra.gmra.mrb[28].mxu0 %vm305_vm2, %v864_v54  ;;  %1743 = vmatprep.subr.bf16.mxu1 %v1940_v0 }
 0x76f   :  { %1738 = vmatpush3.bf16.xpose.msra.mxu0 %v1019_v55  ;;  %1739 = vmatprep.mubr.msk.bf16.mxu0 %vm1941_vm0, %v1940_v0 }
 0x770   :  { %1749 = vmatprep.subr.bf16.mxu0 %v1940_v0 }
 0x774   :  { %1734 = vmatmul.mubr.msk.bf16.vlgmr.msra.gmra.mrb[28].mxu1 %vm305_vm2, %v962_v56 }
 0x775   :  { %1745 = vmatprep.mubr.msk.bf16.mxu1 %vm1941_vm0, %v1940_v0 }
 0x776   :  { %1740 = vmatmul.mubr.msk.bf16.vlgmr.msra.gmra.mrb[32].mxu0 %vm305_vm2, %v1012_v57 }
 0x777   :  { %1751 = vmatprep.mubr.msk.bf16.mxu0 %vm1941_vm0, %v1940_v0 }
 0x83d   :  { %v907_v58 = vpop.f32.mrb[24].mxu1 }
 0x83e   :  { %v1723_v59 = vpop.f32.mrb[25].mxu1 }
 0x83f   :  { %v910_v60 = vpop.f32.mrb[26].mxu1 }
 0x840   :  { %v1724_v61 = vpop.f32.mrb[27].mxu1 }
 0x841   :  { %v955_v62 = vpop.f32.mrb[28].mxu0 }
 0x842   :  { %v1801_v63 = vpack.i.bf16 %v955_v62, %v907_v58  ;;  %v1729_v1 = vpop.f32.mrb[29].mxu0 }
 0x843   :  { %v958_v2 = vpop.f32.mrb[30].mxu0 }
 0x844   :  { %v1730_v3 = vpop.f32.mrb[31].mxu0 }
 0x847   :  { %v1005_v4 = vpop.f32.mrb[28].mxu1 }
 0x848   :  { %v1735_v8 = vpop.f32.mrb[29].mxu1  ;;  %v1061_v9 = vsel %vm305_vm2, %v1005_v4, -inf }
 0x849   :  { %1062 = vmax.xlane.f32.xlu0 %v1061_v9  ;;  %v1008_v10 = vpop.f32.mrb[30].mxu1  ;;  %v1055_v13 = vpop.f32.mrb[32].mxu0 }
 0x84a   :  { %v1736_v14 = vpop.f32.mrb[31].mxu1  ;;  %v1741_v15 = vpop.f32.mrb[33].mxu0  ;;  %v1064_v17 = vsel %vm305_vm2, %v1055_v13, -inf }
 0x84b   :  { %1065 = vmax.xlane.f32.xlu1 %v1064_v17  ;;  %v1058_v18 = vpop.f32.mrb[34].mxu0 }
 0x84c   :  { %v1742_v20 = vpop.f32.mrb[35].mxu0 }
 0x85c   :  { %1133 = vrot.lane.b32.xlu1 %v2158_v40, %s1944_s30 }
 0x860   :  { %1797 = vrot.lane.b32.xlu1 %v1796_v12, %s1945_s18 }
 0x864   :  { %1802 = vrot.lane.b32.xlu1 %v1801_v63, %s1946_s19 }
 0x8d6   :  { %v1063_v22 = vpop.xlane.xlu0 %1062 }
 0x8d7   :  { %v1067_v23 = vsub.f32 %v1005_v4, %v1063_v22  ;;  %v1565_v4 = vld [vmem:[%s2382_s10] ss:$0 sm:$0xff] }
 0x8d8   :  { %v1066_v25 = vpop.xlane.xlu1 %1065 }
 0x8d9   :  { %v1069_v26 = vmul.f32 1.442695, %v1067_v23  ;;  %v1068_v27 = vsub.f32 %v1055_v13, %v1066_v25 }
 0x8db   :  { %1849 = vpow2.f32 %v1069_v26  ;;  %v1071_v28 = vmul.f32 1.442695, %v1068_v27 }
 0x8dc   :  { %v1134_v30 = vpop.permute.xlu1 %1133 }
 0x8dd   :  { %1851 = vpow2.f32 %v1071_v28  ;;  %v1139_v31 = vsel %vm425_vm3, %v1134_v30, 0 }
 0x8de   :  { %1750 = vmatpush3.bf16.msra.mxu0 %v1139_v31 }
 0x8df   :  { %1763 = vmatprep.subr.bf16.mxu0 %v1940_v0 }
 0x8e0   :  { %v1798_v52 = vpop.permute.xlu1 %1797 }
 0x8e1   :  { %v1800_v29 = vunpack.i.h.bf16 %v1798_v52  ;;  %v1799_v54 = vunpack.i.l.bf16 %v1798_v52 }
 0x8e3   :  { %v1206_v58 = vsel %vm305_vm2, %v2194_v21, %v1800_v29  ;;  %v1205_v59 = vsel %vm305_vm2, %v2192_v16, %v1799_v54 }
 0x8e4   :  { %v1803_v53 = vpop.permute.xlu1 %1802 }
 0x8e5   :  { %v1850_v40 = vpop.eup %1849  ;;  %v1805_v55 = vunpack.i.h.bf16 %v1803_v53  ;;  %v1804_v56 = vunpack.i.l.bf16 %v1803_v53 }
 0x8e6   :  { %v1073_v7 = vsel %vm305_vm2, %v1850_v40, 0.0 }
 0x8e7   :  { %v1852_v11 = vpop.eup %1851  ;;  %1074 = vadd.xlane.f32.xlu0 %v1073_v7  ;;  %v1208_v62 = vsel %vm1207_vm4, %v1205_v59, %v1804_v56  ;;  %v1209_v63 = vsel %vm1207_vm4, %v1206_v58, %v1805_v55  ;;  %v1821_v7 = vld [vmem:[%s2378_s6] sm:$0xff]  }
 0x8e8   :  { %v1076_v12 = vsel %vm305_vm2, %v1852_v11, 0.0 }
 0x8eb   :  { %1077 = vadd.xlane.f32.xlu0 %v1076_v12 }
 0x901   :  { %1085 = vrot.lane.b32.xlu0 %v2156_v39, %s1944_s30 }
 0x974   :  { %v1075_v32 = vpop.xlane.xlu0 %1074 }
 0x975   :  { %1853 = vrcp.f32 %v1075_v32 }
 0x978   :  { %v1078_v33 = vpop.xlane.xlu0 %1077 }
 0x979   :  { %1855 = vrcp.f32 %v1078_v33 }
 0x97c   :  { %v1086_v34 = vpop.permute.xlu0 %1085 }
 0x97d   :  { %v1091_v36 = vsel %vm425_vm3, %v1086_v34, 0 }
 0x97e   :  { %1744 = vmatpush3.bf16.msra.mxu1 %v1091_v36 }
 0x97f   :  { %v1854_v37 = vpop.eup %1853  ;;  %1755 = vmatprep.subr.bf16.mxu1 %v1940_v0 }
 0x980   :  { %v1081_v38 = vmul.f32 %v1854_v37, %v1850_v40  ;;  %v1820_v40 = vld [vmem:[%s2377_s5 + $0x8] sm:$0xff]  }
 0x982   :  { %v1083_v41 = vpack.c.bf16 %v1081_v38, %v1081_v38 }
 0x983   :  { %v1856_v19 = vpop.eup %1855 }
 0x984   :  { %v1082_v24 = vmul.f32 %v1856_v19, %v1852_v11  ;;  %1746 = vmatmul.mubr.msk.bf16.vlgmr.msra.gmra.mrb[32].mxu1 %vm305_vm2, %v1083_v41  ;;  %v1822_v11 = vld [vmem:[%s2378_s6 + $0x8] sm:$0xff]   ;;  %v1569_v19 = vld [vmem:[%s2385_s13] ss:$0 sm:$0xff] }
 0x985   :  { %1759 = vmatprep.mubr.msk.bf16.mxu1 %vm1941_vm0, %v1940_v0  ;;  %1756 = vmatpush3.bf16.msra.mxu1 %v1817_v42 }
 0x986   :  { %v1084_v39 = vpack.c.bf16 %v1082_v24, %v1082_v24  ;;  %1757 = vmatprep.subr.bf16.mxu1 %v1940_v0 }
 0x988   :  { %1752 = vmatmul.mubr.msk.bf16.vlgmr.msra.gmra.mrb[36].mxu0 %vm305_vm2, %v1084_v39 }
 0x989   :  { %1767 = vmatprep.mubr.msk.bf16.mxu0 %vm1941_vm0, %v1940_v0  ;;  %1758 = vmatpush3.bf16.msra.mxu1 %v1818_v35  ;;  %v1570_v35 = vld [vmem:[%s2386_s14] ss:$0 sm:$0xff] }
 0x98a   :  { %1771 = vmatprep.subr.bf16.mxu1 %v1940_v0 }
 0xa57   :  { %v1127_v43 = vpop.f32.mrb[32].mxu1 }
 0xa58   :  { %v1747_v44 = vpop.f32.mrb[33].mxu1 }
 0xa59   :  { %v1130_v45 = vpop.f32.mrb[34].mxu1 }
 0xa5a   :  { %v1748_v46 = vpop.f32.mrb[35].mxu1 }
 0xa5b   :  { %v1175_v47 = vpop.f32.mrb[36].mxu0 }
 0xa5c   :  { %v1806_v48 = vpack.i.bf16 %v1175_v47, %v1127_v43  ;;  %v1753_v49 = vpop.f32.mrb[37].mxu0  ;;  %v1823_v47 = vld [vmem:[%s2378_s6 + $0x10] sm:$0xff]  }
 0xa5d   :  { %v1178_v50 = vpop.f32.mrb[38].mxu0  ;;  %v1571_v49 = vld [vmem:[%s2383_s11] ss:$0 sm:$0xff] }
 0xa5e   :  { %1807 = vrot.lane.b32.xlu0 %v1806_v48, %s1947_s3  ;;  %v1754_v51 = vpop.f32.mrb[39].mxu0  ;;  %v1824_v48 = vld [vmem:[%s2378_s6 + $0x18] sm:$0xff]  }
 0xad0   :  { %v1808_v57 = vpop.permute.xlu0 %1807 }
 0xad1   :  { %v1810_v60 = vunpack.i.h.bf16 %v1808_v57  ;;  %v1809_v61 = vunpack.i.l.bf16 %v1808_v57 }
 0xad3   :  { %v1212_v1 = vsel %vm1210_vm5, %v1209_v63, %v1810_v60  ;;  %v1211_v2 = vsel %vm1210_vm5, %v1208_v62, %v1809_v61 }
 0xad4   :  { %v1213_v3 = vpack.c.bf16 %v1212_v1, %v1211_v2 }
 0xad6   :  { %1760 = vmatmul.mubr.msk.bf16.vlgmr.msra.gmra.mrb[36].mxu1 %vm124_vm1, %v1213_v3 }
 0xad7   :  { %1779 = vmatprep.mubr.msk.bf16.mxu1 %vm1941_vm0, %v1940_v0  ;;  %1772 = vmatpush3.bf16.msra.mxu1 %v1821_v7 }
 0xad8   :  { %1773 = vmatprep.subr.bf16.mxu1 %v1940_v0 }
 0xadb   :  { %1774 = vmatpush3.bf16.msra.mxu1 %v1822_v11 }
 0xadc   :  { %1775 = vmatprep.subr.bf16.mxu1 %v1940_v0 }
 0xadf   :  { %1776 = vmatpush3.bf16.msra.mxu1 %v1823_v47 }
 0xae0   :  { %1777 = vmatprep.subr.bf16.mxu1 %v1940_v0 }
 0xae3   :  { %1778 = vmatpush3.bf16.msra.mxu1 %v1824_v48 }
 0xba9   :  { %v1274_v21 = vpop.f32.mrb[36].mxu1 }
 0xbaa   :  { %v1275_v8 = vadd.f32 %v1565_v4, %v1274_v21  ;;  %v1761_v9 = vpop.f32.mrb[37].mxu1 }
 0xbab   :  { %v1277_v16 = vpop.f32.mrb[38].mxu1 }
 0xbac   :  { %v1278_v10 = vadd.f32 %v1565_v4, %v1277_v16  ;;  %v1762_v13 = vpop.f32.mrb[39].mxu1  ;;  %v1281_v14 = vadd.f32 %v1275_v8, %v2101_v5 }
 0xbae   :  { %v1283_v15 = vsel %vm124_vm1, %v1281_v14, 0.0  ;;  %v1282_v17 = vadd.f32 %v1278_v10, %v2106_v6  ;;  %v1819_v6 = vld [vmem:[%s2377_s5] sm:$0xff]  }
 0xbaf   :  { %1284 = vadd.xlane.f32.xlu1 %v1283_v15  ;;  %1764 = vmatpush3.bf16.msra.mxu0 %v1819_v6  ;;  %v1582_v6 = vld [vmem:[%s2388_s16] ss:$0 sm:$0xff] }
 0xbb0   :  { %v1286_v18 = vsel %vm124_vm1, %v1282_v17, 0.0  ;;  %1765 = vmatprep.subr.bf16.mxu0 %v1940_v0  ;;  %v1575_v0 = vld [vmem:[%s2384_s12] ss:$0 sm:$0xff] }
 0xbb1   :  { %1287 = vadd.xlane.f32.xlu0 %v1286_v18 }
 0xbb3   :  { %1766 = vmatpush3.bf16.msra.mxu0 %v1820_v40 }
 0xc3c   :  { %v1285_v20 = vpop.xlane.xlu1 %1284 }
 0xc3d   :  { %v1290_v22 = vmul.f32 0.03125, %v1285_v20 }
 0xc3e   :  { %v1288_v23 = vpop.xlane.xlu0 %1287 }
 0xc3f   :  { %v1292_v25 = vsub.f32 %v1281_v14, %v1290_v22  ;;  %v1291_v26 = vmul.f32 0.03125, %v1288_v23 }
 0xc41   :  { %v1293_v27 = vsub.f32 %v1282_v17, %v1291_v26  ;;  %v1294_v28 = vmul.f32 %v1292_v25, %v1292_v25 }
 0xc43   :  { %v1296_v30 = vsel %vm124_vm1, %v1294_v28, 0.0  ;;  %v1295_v31 = vmul.f32 %v1293_v27, %v1293_v27 }
 0xc44   :  { %1297 = vadd.xlane.f32.xlu0 %v1296_v30  ;;  %v1581_v30 = vld [vmem:[%s2387_s15] ss:$0 sm:$0xff] }
 0xc45   :  { %v1299_v5 = vsel %vm124_vm1, %v1295_v31, 0.0 }
 0xc48   :  { %1300 = vadd.xlane.f32.xlu0 %v1299_v5 }
 0xcd1   :  { %v1298_v12 = vpop.xlane.xlu0 %1297 }
 0xcd2   :  { %v1302_v32 = vmul.f32 0.03125, %v1298_v12 }
 0xcd4   :  { %v1304_v33 = vadd.f32 1e-12, %v1302_v32 }
 0xcd5   :  { %v1301_v34 = vpop.xlane.xlu0 %1300 }
 0xcd6   :  { %1857 = vrsqrt.f32 %v1304_v33  ;;  %v1303_v36 = vmul.f32 0.03125, %v1301_v34 }
 0xcd8   :  { %v1305_v37 = vadd.f32 1e-12, %v1303_v36 }
 0xcda   :  { %1859 = vrsqrt.f32 %v1305_v37 }
 0xce0   :  { %v1858_v38 = vpop.eup %1857 }
 0xce1   :  { %v1308_v41 = vmul.f32 %v1858_v38, %v1292_v25 }
 0xce3   :  { %v1317_v39 = vmul.f32 %v1569_v19, %v1308_v41 }
 0xce4   :  { %v1860_v24 = vpop.eup %1859 }
 0xce5   :  { %v1309_v42 = vmul.f32 %v1860_v24, %v1293_v27  ;;  %v1326_v44 = vadd.f32 %v1570_v35, %v1317_v39 }
 0xce7   :  { %v1318_v43 = vmul.f32 %v1569_v19, %v1309_v42 }
 0xce9   :  { %v1327_v45 = vadd.f32 %v1570_v35, %v1318_v43 }
 0xceb   :  { %v1328_v46 = vpack.c.bf16 %v1327_v45, %v1326_v44 }
 0xced   :  { %1768 = vmatmul.mubr.msk.bf16.vlgmr.msra.gmra.mrb[40].mxu0 %vm124_vm1, %v1328_v46 }
 0xdc0   :  { %v1389_v50 = vpop.f32.mrb[40].mxu0 }
 0xdc1   :  { %v1390_v51 = vadd.f32 %v1571_v49, %v1389_v50  ;;  %v1769_v52 = vpop.f32.mrb[41].mxu0 }
 0xdc2   :  { %v1392_v53 = vpop.f32.mrb[42].mxu0 }
 0xdc3   :  { %v1393_v29 = vadd.f32 %v1571_v49, %v1392_v53  ;;  %v1770_v54 = vpop.f32.mrb[43].mxu0  ;;  %v1396_v55 = vmax.f32 %v1390_v51, 0.0 }
 0xdc5   :  { %v1397_v56 = vmax.f32 %v1393_v29, 0.0 }
 0xdc7   :  { %v1398_v57 = vpack.c.bf16 %v1397_v56, %v1396_v55 }
 0xdc9   :  { %1780 = vmatmul.mubr.msk.bf16.vlgmr.msra.gmra.mrb[40].mxu1 %vm1438_vm6, %v1398_v57 }
 0xe9c   :  { %v1476_v58 = vpop.f32.mrb[40].mxu1 }
 0xe9d   :  { %v1477_v59 = vadd.f32 %v1575_v0, %v1476_v58  ;;  %v1781_v60 = vpop.f32.mrb[41].mxu1 }
 0xe9e   :  { %v1479_v61 = vpop.f32.mrb[42].mxu1 }
 0xe9f   :  { %v1480_v62 = vadd.f32 %v1575_v0, %v1479_v61  ;;  %v1782_v63 = vpop.f32.mrb[43].mxu1  ;;  %v1483_v1 = vadd.f32 %v1477_v59, %v1326_v44 }
 0xea1   :  { %v1485_v2 = vsel %vm124_vm1, %v1483_v1, 0.0  ;;  %v1484_v3 = vadd.f32 %v1480_v62, %v1327_v45 }
 0xea2   :  { %1486 = vadd.xlane.f32.xlu1 %v1485_v2 }
 0xea3   :  { %v1488_v4 = vsel %vm124_vm1, %v1484_v3, 0.0 }
 0xea4   :  { %1489 = vadd.xlane.f32.xlu0 %v1488_v4 }
 0xf2f   :  { %v1487_v21 = vpop.xlane.xlu1 %1486 }
 0xf30   :  { %v1491_v8 = vmul.f32 0.03125, %v1487_v21 }
 0xf31   :  { %v1490_v9 = vpop.xlane.xlu0 %1489 }
 0xf32   :  { %v1493_v16 = vsub.f32 %v1483_v1, %v1491_v8  ;;  %v1492_v10 = vmul.f32 0.03125, %v1490_v9 }
 0xf34   :  { %v1494_v13 = vsub.f32 %v1484_v3, %v1492_v10  ;;  %v1495_v14 = vmul.f32 %v1493_v16, %v1493_v16 }
 0xf36   :  { %v1497_v15 = vsel %vm124_vm1, %v1495_v14, 0.0  ;;  %v1496_v17 = vmul.f32 %v1494_v13, %v1494_v13 }
 0xf37   :  { %1498 = vadd.xlane.f32.xlu1 %v1497_v15 }
 0xf38   :  { %v1500_v18 = vsel %vm124_vm1, %v1496_v17, 0.0 }
 0xf39   :  { %1501 = vadd.xlane.f32.xlu0 %v1500_v18 }
 0xfc4   :  { %v1499_v20 = vpop.xlane.xlu1 %1498 }
 0xfc5   :  { %v1503_v22 = vmul.f32 0.03125, %v1499_v20 }
 0xfc6   :  { %v1502_v23 = vpop.xlane.xlu0 %1501 }
 0xfc7   :  { %v1505_v25 = vadd.f32 1e-12, %v1503_v22  ;;  %v1504_v26 = vmul.f32 0.03125, %v1502_v23 }
 0xfc9   :  { %1861 = vrsqrt.f32 %v1505_v25  ;;  %v1506_v27 = vadd.f32 1e-12, %v1504_v26 }
 0xfcb   :  { %1863 = vrsqrt.f32 %v1506_v27 }
 0xfd3   :  { %v1862_v28 = vpop.eup %1861 }
 0xfd4   :  { %v1509_v31 = vmul.f32 %v1862_v28, %v1493_v16 }
 0xfd5   :  { %v1864_v5 = vpop.eup %1863 }
 0xfd6   :  { %v1518_v40 = vmul.f32 %v1581_v30, %v1509_v31  ;;  %v1510_v7 = vmul.f32 %v1864_v5, %v1494_v13 }
 0xfd8   :  { %v1527_v11 = vadd.f32 %v1582_v6, %v1518_v40  ;;  %v1519_v12 = vmul.f32 %v1581_v30, %v1510_v7 }
 0xfda   :  { %1529 = vst.msk [vmem:[%s2389_s17] sm:$0xff] %vm124_vm1, %v1527_v11  ;;  %v1528_v32 = vadd.f32 %v1582_v6, %v1519_v12 }
 0xfdc   :  { %1530 = vst.msk [vmem:[%s2389_s17 + $0x8] sm:$0xff] %vm124_vm1, %v1528_v32 }
 0xfdd   :  { %1535 = vsyncpa [#allocation3], 1 }
 0xfde   :  { %1536 = vsyncpa [#allocation5], 1 }

</bundles_post_ra>
